<compile_context>
chip_gen: v7x
topology: tpu7x:2x2x1
jax: 0.10.0
libtpu: 0.0.40
codegen_flags: <defaults>
</compile_context>

<pallas_src>
import numpy as np

import jax
import jax.numpy as jnp
from jax.experimental import pallas as pl
from jax.experimental.pallas import tpu as pltpu

BN_EPS = 1e-5
# bf16 MXU operands on all generations (f32 accumulate + f32 epilogue).  Flip
# to False for a bit-tight f32 check (agreement ~2e-4 with the reference).
USE_BF16_MXU = True


def _mx(v):
    return v.astype(jnp.bfloat16) if USE_BF16_MXU else v


# ------------------------------ Pallas kernel -------------------------------

def encoder_kernel(p1_ref, w1_ref, g1_ref, bt1_ref,
                   s2_ref, w2_ref, g2_ref, bt2_ref,
                   s3_ref, w3_ref, g3_ref, bt3_ref,
                   q_ref, wh_ref, bh_ref, o_ref):
    """Entire Encoder forward. Activations are lane-dense (C, B*OH*OW) f32."""
    B = o_ref.shape[1]

    def bn_relu(y, g_ref, b_ref):
        # Train-mode BatchNorm2d: per-channel (per-row) stats over the lane
        # axis (B*OH*OW); two-pass, biased variance; f32 VPU epilogue.
        inv_m = 1.0 / y.shape[1]
        mu = jnp.sum(y, axis=1, keepdims=True) * inv_m
        d = y - mu
        var = jnp.sum(d * d, axis=1, keepdims=True) * inv_m
        y_hat = d * jax.lax.rsqrt(var + BN_EPS)
        return jnp.maximum(y_hat * g_ref[...] + b_ref[...], 0.0)

    def conv_layer(act, s_ref, w_ref, n_in, n_out):
        # act    : (Cin, B*n_in) f32
        # s_ref  : (n_in, 9*n_out) per-sample one-hot im2col (batch-independent)
        # w_ref  : (Cout, 9*Cin), columns ordered (kernel offset r, ci)
        # Per sample: ONE gather matmul fusing all 9 offsets, then rearrange the
        # result into a (9*Cin, n_out) patch tile.  One wide-K conv matmul over
        # the whole batch; accumulation over (r, ci) happens inside the MXU.
        cols = []
        for b in range(B):
            act_b = _mx(act[:, b * n_in:(b + 1) * n_in])            # (Cin, n_in)
            g_b = jnp.dot(act_b, s_ref[...],
                          preferred_element_type=jnp.float32)       # (Cin, 9*n_out)
            pieces = [g_b[:, r * n_out:(r + 1) * n_out] for r in range(9)]
            cols.append(jnp.concatenate(pieces, axis=0))            # (9*Cin, n_out)
        stacked = jnp.concatenate(cols, axis=1)                     # (9*Cin, B*n_out)
        return jnp.dot(w_ref[...], _mx(stacked),
                       preferred_element_type=jnp.float32)          # (Cout, B*n_out)

    # ---- layer 1: one matmul on the wrapper-built (9, B*169) patch matrix
    y1 = jnp.dot(w1_ref[...], p1_ref[...],
                 preferred_element_type=jnp.float32)                # (8, B*169)
    a1 = bn_relu(y1, g1_ref, bt1_ref)

    # ---- layers 2 & 3: in-kernel im2col (per-sample S) + wide-K conv matmul
    a2 = bn_relu(conv_layer(a1, s2_ref, w2_ref, 169, 36), g2_ref, bt2_ref)  # (16, B*36)
    a3 = bn_relu(conv_layer(a2, s3_ref, w3_ref, 36, 4), g3_ref, bt3_ref)    # (32, B*4)

    # ---- fused mean/logvar heads: build X (128, B) with rows (n, c), columns b,
    # via 4 tiny batch-select matmuls, then ONE fully-filled K=128 matmul.
    a3m = _mx(a3)
    q = q_ref[...]                                                  # (B*4, 4*B)
    sels = [jnp.dot(a3m, q[:, n * B:(n + 1) * B],
                    preferred_element_type=jnp.float32) for n in range(4)]
    x128 = _mx(jnp.concatenate(sels, axis=0))                       # (128, B)
    o_ref[...] = jnp.dot(wh_ref[...], x128,
                         preferred_element_type=jnp.float32) + bh_ref[...]
    # NOTE: (2L, B) with B=2 lanes -> masked store; negligible here (see TODO).


# ------------------------------- JAX wrapper ---------------------------------

def _im2col_matrix(hin, win, k, stride):
    """Per-sample one-hot (hin*win, k*k*hout*wout) matrix: act_b @ S performs
    im2col for ALL k*k offsets at once.  Batch-independent; built with numpy at
    trace time -> compile-time constant under jit."""
    hout = (hin - k) // stride + 1
    wout = (win - k) // stride + 1
    nin, nout = hin * win, hout * wout
    s = np.zeros((nin, k * k * nout), np.float32)
    for i in range(k):
        for j in range(k):
            r = i * k + j
            for oh in range(hout):
                for ow in range(wout):
                    m = (stride * oh + i) * win + (stride * ow + j)
                    s[m, r * nout + (oh * wout + ow)] = 1.0
    return s


def _batch_select(batch, n_spatial):
    """One-hot (B*n_spatial, n_spatial*B): column block n selects, for every
    sample b, lane b*n_spatial + n.  Size is linear in B (was B^2 before)."""
    q = np.zeros((batch * n_spatial, n_spatial * batch), np.float32)
    for n in range(n_spatial):
        for b in range(batch):
            q[b * n_spatial + n, n * batch + b] = 1.0
    return q


def encoder_forward(x, params):
    B = x.shape[0]
    L = params["wm"].shape[0]
    img = x.reshape(B, 1, 28, 28)[:, 0]                       # (B, 28, 28)

    # Layer-1 im2col in the wrapper: (9, B*169) (~12 KB) straight from the input.
    cols = []
    for i in range(3):
        for j in range(3):
            cols.append(img[:, i:i + 25:2, j:j + 25:2].reshape(B * 13 * 13))
    p1 = jnp.stack(cols, axis=0)                               # (9, B*169)

    # Conv weights flattened to (Cout, 9*Cin), columns ordered (r = i*3+j, ci).
    w1f = params["w1"].reshape(8, 9)                           # Cin=1
    w2f = params["w2"].transpose(0, 2, 3, 1).reshape(16, 72)
    w3f = params["w3"].transpose(0, 2, 3, 1).reshape(32, 144)

    # Per-sample (batch-independent) one-hot im2col matrices; 2-D, bf16-exact.
    s2 = jnp.asarray(_im2col_matrix(13, 13, 3, 2))             # (169, 324)
    s3 = jnp.asarray(_im2col_matrix(6, 6, 3, 2))               # (36, 36)
    q = jnp.asarray(_batch_select(B, 4))                       # (B*4, 4*B)

    # Fused heads: concatenated weight, columns reordered to match X's (n, c)
    # row order; single bias column.
    wcat = jnp.concatenate([params["wm"], params["wv"]], axis=0)       # (2L, 128)
    wre = wcat.reshape(2 * L, 32, 4).transpose(0, 2, 1).reshape(2 * L, 128)
    bcat = jnp.concatenate([params["bm"], params["bv"]]).reshape(2 * L, 1)

    mm = _mx  # bf16 MXU operands shipped from the wrapper (halves their DMA)

    vspec = lambda: pl.BlockSpec(memory_space=pltpu.MemorySpace.VMEM)
    out_t = pl.pallas_call(
        encoder_kernel,
        out_shape=jax.ShapeDtypeStruct((2 * L, B), jnp.float32),
        in_specs=[vspec() for _ in range(15)],
        out_specs=vspec(),
    )(mm(p1), mm(w1f),
      params["g1"].reshape(8, 1), params["bt1"].reshape(8, 1),
      mm(s2), mm(w2f),
      params["g2"].reshape(16, 1), params["bt2"].reshape(16, 1),
      mm(s3), mm(w3f),
      params["g3"].reshape(32, 1), params["bt3"].reshape(32, 1),
      mm(q), mm(wre), bcat)
    # NOTE: conv biases b1/b2/b3 are intentionally NOT passed — a per-channel
    # constant added before train-mode BN is cancelled by the mean subtraction.

    out = out_t.T                                              # (B, 2L)
    return out[:, :L], out[:, L:]


# ----------------------- pure-JAX reference (check) --------------------------

def encoder_reference(x, params):
    def conv(x, w, b, stride=2):
        y = jax.lax.conv_general_dilated(
            x, w, (stride, stride), "VALID",
            dimension_numbers=("NCHW", "OIHW", "NCHW"))
        return y + b.reshape(1, -1, 1, 1)

    def bn_train(y, g, bt):
        mu = y.mean(axis=(0, 2, 3), keepdims=True)
        var = ((y - mu) ** 2).mean(axis=(0, 2, 3), keepdims=True)
        return ((y - mu) * jax.lax.rsqrt(var + BN_EPS)
                * g.reshape(1, -1, 1, 1) + bt.reshape(1, -1, 1, 1))

    B = x.shape[0]
    x = x.reshape(B, 1, 28, 28)
    x = jax.nn.relu(bn_train(conv(x, params["w1"], params["b1"]), params["g1"], params["bt1"]))
    x = jax.nn.relu(bn_train(conv(x, params["w2"], params["b2"]), params["g2"], params["bt2"]))
    x = jax.nn.relu(bn_train(conv(x, params["w3"], params["b3"]), params["g3"], params["bt3"]))
    x = x.reshape(B, -1)
    mean = x @ params["wm"].T + params["bm"]
    logvar = x @ params["wv"].T + params["bv"]
    return mean, logvar


# ---------------------------------- main --------------------------------------

def init_params(key, latent_dim):
    ks = jax.random.split(key, 16)
    f = lambda k, s, sc=0.1: (sc * jax.random.normal(k, s)).astype(jnp.float32)
    return {
        "w1": f(ks[0], (8, 1, 3, 3)),   "b1": f(ks[1], (8,)),
        "g1": 1.0 + f(ks[2], (8,)),     "bt1": f(ks[3], (8,)),
        "w2": f(ks[4], (16, 8, 3, 3)),  "b2": f(ks[5], (16,)),
        "g2": 1.0 + f(ks[6], (16,)),    "bt2": f(ks[7], (16,)),
        "w3": f(ks[8], (32, 16, 3, 3)), "b3": f(ks[9], (32,)),
        "g3": 1.0 + f(ks[10], (32,)),   "bt3": f(ks[11], (32,)),
        "wm": f(ks[12], (latent_dim, 32 * 2 * 2)), "bm": f(ks[13], (latent_dim,)),
        "wv": f(ks[14], (latent_dim, 32 * 2 * 2)), "bv": f(ks[15], (latent_dim,)),
    }


if __name__ == "__main__":
    latent_dim = 16
    key = jax.random.PRNGKey(0)
    k_x, k_p = jax.random.split(key)
    x = jax.random.normal(k_x, (2, 784), dtype=jnp.float32)
    params = init_params(k_p, latent_dim)

    mean, logvar = jax.jit(encoder_forward)(x, params)
    jax.block_until_ready((mean, logvar))

    mean_ref, logvar_ref = encoder_reference(x, params)
    assert mean.shape == (2, latent_dim) and logvar.shape == (2, latent_dim)
    # bf16 MXU operands (f32 accumulate/epilogue) vs the all-f32 reference:
    # tolerance widened accordingly (flip USE_BF16_MXU=False for ~2e-4 match).
    tol = 5e-2 if USE_BF16_MXU else 2e-4
    assert jnp.allclose(mean, mean_ref, atol=tol, rtol=tol)
    assert jnp.allclose(logvar, logvar_ref, atol=tol, rtol=tol)

    print("KERNEL_OK")
</pallas_src>

<mosaic_0001>
module attributes {stable_mosaic.version = 11 : i64} {
  func.func @encoder_kernel(%arg0: memref<9x338xbf16, #tpu.memory_space<vmem>>, %arg1: memref<8x9xbf16, #tpu.memory_space<vmem>>, %arg2: memref<8x1xf32, #tpu.memory_space<vmem>>, %arg3: memref<8x1xf32, #tpu.memory_space<vmem>>, %arg4: memref<169x324xbf16, #tpu.memory_space<vmem>>, %arg5: memref<16x72xbf16, #tpu.memory_space<vmem>>, %arg6: memref<16x1xf32, #tpu.memory_space<vmem>>, %arg7: memref<16x1xf32, #tpu.memory_space<vmem>>, %arg8: memref<36x36xbf16, #tpu.memory_space<vmem>>, %arg9: memref<32x144xbf16, #tpu.memory_space<vmem>>, %arg10: memref<32x1xf32, #tpu.memory_space<vmem>>, %arg11: memref<32x1xf32, #tpu.memory_space<vmem>>, %arg12: memref<8x8xbf16, #tpu.memory_space<vmem>>, %arg13: memref<32x128xbf16, #tpu.memory_space<vmem>>, %arg14: memref<32x1xf32, #tpu.memory_space<vmem>>, %arg15: memref<32x2xf32, #tpu.memory_space<vmem>>) attributes {dimension_semantics = [], scalar_prefetch = 0 : i64, scratch_operands = 0 : i64, tpu.core_type = #tpu.core_type<tc>} {
    %c0 = arith.constant 0 : index
    %c0_0 = arith.constant 0 : index
    %0 = vector.load %arg1[%c0, %c0_0] : memref<8x9xbf16, #tpu.memory_space<vmem>>, vector<8x9xbf16>
    %c0_1 = arith.constant 0 : index
    %c0_2 = arith.constant 0 : index
    %1 = vector.load %arg0[%c0_1, %c0_2] : memref<9x338xbf16, #tpu.memory_space<vmem>>, vector<9x338xbf16>
    %cst = arith.constant dense<0.000000e+00> : vector<8x338xf32>
    %2 = tpu.matmul %0, %1, %cst {dimension_numbers = #tpu.dot_dimension_numbers<[1], [0], [0], [1], [0, 0, 1, 1], [], []>} : vector<8x9xbf16>, vector<9x338xbf16>, vector<8x338xf32> -> vector<8x338xf32>
    %cst_3 = arith.constant dense<0.000000e+00> : vector<8xf32>
    %3 = vector.multi_reduction <add>, %2, %cst_3 [1] : vector<8x338xf32> to vector<8xf32>
    %4 = vector.shape_cast %3 : vector<8xf32> to vector<8x1xf32>
    %cst_4 = arith.constant 2.958580e-03 : f32
    %5 = vector.broadcast %cst_4 : f32 to vector<8x1xf32>
    %6 = arith.mulf %4, %5 : vector<8x1xf32>
    %7 = vector.broadcast %6 : vector<8x1xf32> to vector<8x338xf32>
    %8 = arith.subf %2, %7 : vector<8x338xf32>
    %9 = arith.mulf %8, %8 : vector<8x338xf32>
    %cst_5 = arith.constant dense<0.000000e+00> : vector<8xf32>
    %10 = vector.multi_reduction <add>, %9, %cst_5 [1] : vector<8x338xf32> to vector<8xf32>
    %11 = vector.shape_cast %10 : vector<8xf32> to vector<8x1xf32>
    %cst_6 = arith.constant 2.958580e-03 : f32
    %12 = vector.broadcast %cst_6 : f32 to vector<8x1xf32>
    %13 = arith.mulf %11, %12 : vector<8x1xf32>
    %cst_7 = arith.constant 9.99999974E-6 : f32
    %14 = vector.broadcast %cst_7 : f32 to vector<8x1xf32>
    %15 = arith.addf %13, %14 : vector<8x1xf32>
    %16 = math.rsqrt %15 : vector<8x1xf32>
    %17 = vector.broadcast %16 : vector<8x1xf32> to vector<8x338xf32>
    %18 = arith.mulf %8, %17 : vector<8x338xf32>
    %c0_8 = arith.constant 0 : index
    %c0_9 = arith.constant 0 : index
    %19 = vector.load %arg2[%c0_8, %c0_9] : memref<8x1xf32, #tpu.memory_space<vmem>>, vector<8x1xf32>
    %20 = vector.broadcast %19 : vector<8x1xf32> to vector<8x338xf32>
    %21 = arith.mulf %18, %20 : vector<8x338xf32>
    %c0_10 = arith.constant 0 : index
    %c0_11 = arith.constant 0 : index
    %22 = vector.load %arg3[%c0_10, %c0_11] : memref<8x1xf32, #tpu.memory_space<vmem>>, vector<8x1xf32>
    %23 = vector.broadcast %22 : vector<8x1xf32> to vector<8x338xf32>
    %24 = arith.addf %21, %23 : vector<8x338xf32>
    %cst_12 = arith.constant 0.000000e+00 : f32
    %25 = vector.broadcast %cst_12 : f32 to vector<8x338xf32>
    %26 = arith.maximumf %24, %25 : vector<8x338xf32>
    %27 = vector.extract_strided_slice %26 {offsets = [0, 0], sizes = [8, 169], strides = [1, 1]} : vector<8x338xf32> to vector<8x169xf32>
    %28 = arith.truncf %27 : vector<8x169xf32> to vector<8x169xbf16>
    %c0_13 = arith.constant 0 : index
    %c0_14 = arith.constant 0 : index
    %29 = vector.load %arg4[%c0_13, %c0_14] : memref<169x324xbf16, #tpu.memory_space<vmem>>, vector<169x324xbf16>
    %cst_15 = arith.constant dense<0.000000e+00> : vector<8x324xf32>
    %30 = tpu.matmul %28, %29, %cst_15 {dimension_numbers = #tpu.dot_dimension_numbers<[1], [0], [0], [1], [0, 0, 1, 1], [], []>} : vector<8x169xbf16>, vector<169x324xbf16>, vector<8x324xf32> -> vector<8x324xf32>
    %31 = vector.extract_strided_slice %30 {offsets = [0, 0], sizes = [8, 36], strides = [1, 1]} : vector<8x324xf32> to vector<8x36xf32>
    %32 = vector.extract_strided_slice %30 {offsets = [0, 36], sizes = [8, 36], strides = [1, 1]} : vector<8x324xf32> to vector<8x36xf32>
    %33 = vector.extract_strided_slice %30 {offsets = [0, 72], sizes = [8, 36], strides = [1, 1]} : vector<8x324xf32> to vector<8x36xf32>
    %34 = vector.extract_strided_slice %30 {offsets = [0, 108], sizes = [8, 36], strides = [1, 1]} : vector<8x324xf32> to vector<8x36xf32>
    %35 = vector.extract_strided_slice %30 {offsets = [0, 144], sizes = [8, 36], strides = [1, 1]} : vector<8x324xf32> to vector<8x36xf32>
    %36 = vector.extract_strided_slice %30 {offsets = [0, 180], sizes = [8, 36], strides = [1, 1]} : vector<8x324xf32> to vector<8x36xf32>
    %37 = vector.extract_strided_slice %30 {offsets = [0, 216], sizes = [8, 36], strides = [1, 1]} : vector<8x324xf32> to vector<8x36xf32>
    %38 = vector.extract_strided_slice %30 {offsets = [0, 252], sizes = [8, 36], strides = [1, 1]} : vector<8x324xf32> to vector<8x36xf32>
    %39 = vector.extract_strided_slice %30 {offsets = [0, 288], sizes = [8, 36], strides = [1, 1]} : vector<8x324xf32> to vector<8x36xf32>
    %40 = tpu.concatenate %31, %32, %33, %34, %35, %36, %37, %38, %39 in 0 : vector<8x36xf32>, vector<8x36xf32>, vector<8x36xf32>, vector<8x36xf32>, vector<8x36xf32>, vector<8x36xf32>, vector<8x36xf32>, vector<8x36xf32>, vector<8x36xf32> -> vector<72x36xf32>
    %41 = vector.extract_strided_slice %26 {offsets = [0, 169], sizes = [8, 169], strides = [1, 1]} : vector<8x338xf32> to vector<8x169xf32>
    %42 = arith.truncf %41 : vector<8x169xf32> to vector<8x169xbf16>
    %c0_16 = arith.constant 0 : index
    %c0_17 = arith.constant 0 : index
    %43 = vector.load %arg4[%c0_16, %c0_17] : memref<169x324xbf16, #tpu.memory_space<vmem>>, vector<169x324xbf16>
    %cst_18 = arith.constant dense<0.000000e+00> : vector<8x324xf32>
    %44 = tpu.matmul %42, %43, %cst_18 {dimension_numbers = #tpu.dot_dimension_numbers<[1], [0], [0], [1], [0, 0, 1, 1], [], []>} : vector<8x169xbf16>, vector<169x324xbf16>, vector<8x324xf32> -> vector<8x324xf32>
    %45 = vector.extract_strided_slice %44 {offsets = [0, 0], sizes = [8, 36], strides = [1, 1]} : vector<8x324xf32> to vector<8x36xf32>
    %46 = vector.extract_strided_slice %44 {offsets = [0, 36], sizes = [8, 36], strides = [1, 1]} : vector<8x324xf32> to vector<8x36xf32>
    %47 = vector.extract_strided_slice %44 {offsets = [0, 72], sizes = [8, 36], strides = [1, 1]} : vector<8x324xf32> to vector<8x36xf32>
    %48 = vector.extract_strided_slice %44 {offsets = [0, 108], sizes = [8, 36], strides = [1, 1]} : vector<8x324xf32> to vector<8x36xf32>
    %49 = vector.extract_strided_slice %44 {offsets = [0, 144], sizes = [8, 36], strides = [1, 1]} : vector<8x324xf32> to vector<8x36xf32>
    %50 = vector.extract_strided_slice %44 {offsets = [0, 180], sizes = [8, 36], strides = [1, 1]} : vector<8x324xf32> to vector<8x36xf32>
    %51 = vector.extract_strided_slice %44 {offsets = [0, 216], sizes = [8, 36], strides = [1, 1]} : vector<8x324xf32> to vector<8x36xf32>
    %52 = vector.extract_strided_slice %44 {offsets = [0, 252], sizes = [8, 36], strides = [1, 1]} : vector<8x324xf32> to vector<8x36xf32>
    %53 = vector.extract_strided_slice %44 {offsets = [0, 288], sizes = [8, 36], strides = [1, 1]} : vector<8x324xf32> to vector<8x36xf32>
    %54 = tpu.concatenate %45, %46, %47, %48, %49, %50, %51, %52, %53 in 0 : vector<8x36xf32>, vector<8x36xf32>, vector<8x36xf32>, vector<8x36xf32>, vector<8x36xf32>, vector<8x36xf32>, vector<8x36xf32>, vector<8x36xf32>, vector<8x36xf32> -> vector<72x36xf32>
    %55 = tpu.concatenate %40, %54 in 1 : vector<72x36xf32>, vector<72x36xf32> -> vector<72x72xf32>
    %c0_19 = arith.constant 0 : index
    %c0_20 = arith.constant 0 : index
    %56 = vector.load %arg5[%c0_19, %c0_20] : memref<16x72xbf16, #tpu.memory_space<vmem>>, vector<16x72xbf16>
    %57 = arith.truncf %55 : vector<72x72xf32> to vector<72x72xbf16>
    %cst_21 = arith.constant dense<0.000000e+00> : vector<16x72xf32>
    %58 = tpu.matmul %56, %57, %cst_21 {dimension_numbers = #tpu.dot_dimension_numbers<[1], [0], [0], [1], [0, 0, 1, 1], [], []>} : vector<16x72xbf16>, vector<72x72xbf16>, vector<16x72xf32> -> vector<16x72xf32>
    %cst_22 = arith.constant dense<0.000000e+00> : vector<16xf32>
    %59 = vector.multi_reduction <add>, %58, %cst_22 [1] : vector<16x72xf32> to vector<16xf32>
    %60 = vector.shape_cast %59 : vector<16xf32> to vector<16x1xf32>
    %cst_23 = arith.constant 0.013888889 : f32
    %61 = vector.broadcast %cst_23 : f32 to vector<16x1xf32>
    %62 = arith.mulf %60, %61 : vector<16x1xf32>
    %63 = vector.broadcast %62 : vector<16x1xf32> to vector<16x72xf32>
    %64 = arith.subf %58, %63 : vector<16x72xf32>
    %65 = arith.mulf %64, %64 : vector<16x72xf32>
    %cst_24 = arith.constant dense<0.000000e+00> : vector<16xf32>
    %66 = vector.multi_reduction <add>, %65, %cst_24 [1] : vector<16x72xf32> to vector<16xf32>
    %67 = vector.shape_cast %66 : vector<16xf32> to vector<16x1xf32>
    %cst_25 = arith.constant 0.013888889 : f32
    %68 = vector.broadcast %cst_25 : f32 to vector<16x1xf32>
    %69 = arith.mulf %67, %68 : vector<16x1xf32>
    %cst_26 = arith.constant 9.99999974E-6 : f32
    %70 = vector.broadcast %cst_26 : f32 to vector<16x1xf32>
    %71 = arith.addf %69, %70 : vector<16x1xf32>
    %72 = math.rsqrt %71 : vector<16x1xf32>
    %73 = vector.broadcast %72 : vector<16x1xf32> to vector<16x72xf32>
    %74 = arith.mulf %64, %73 : vector<16x72xf32>
    %c0_27 = arith.constant 0 : index
    %c0_28 = arith.constant 0 : index
    %75 = vector.load %arg6[%c0_27, %c0_28] : memref<16x1xf32, #tpu.memory_space<vmem>>, vector<16x1xf32>
    %76 = vector.broadcast %75 : vector<16x1xf32> to vector<16x72xf32>
    %77 = arith.mulf %74, %76 : vector<16x72xf32>
    %c0_29 = arith.constant 0 : index
    %c0_30 = arith.constant 0 : index
    %78 = vector.load %arg7[%c0_29, %c0_30] : memref<16x1xf32, #tpu.memory_space<vmem>>, vector<16x1xf32>
    %79 = vector.broadcast %78 : vector<16x1xf32> to vector<16x72xf32>
    %80 = arith.addf %77, %79 : vector<16x72xf32>
    %cst_31 = arith.constant 0.000000e+00 : f32
    %81 = vector.broadcast %cst_31 : f32 to vector<16x72xf32>
    %82 = arith.maximumf %80, %81 : vector<16x72xf32>
    %83 = vector.extract_strided_slice %82 {offsets = [0, 0], sizes = [16, 36], strides = [1, 1]} : vector<16x72xf32> to vector<16x36xf32>
    %84 = arith.truncf %83 : vector<16x36xf32> to vector<16x36xbf16>
    %c0_32 = arith.constant 0 : index
    %c0_33 = arith.constant 0 : index
    %85 = vector.load %arg8[%c0_32, %c0_33] : memref<36x36xbf16, #tpu.memory_space<vmem>>, vector<36x36xbf16>
    %cst_34 = arith.constant dense<0.000000e+00> : vector<16x36xf32>
    %86 = tpu.matmul %84, %85, %cst_34 {dimension_numbers = #tpu.dot_dimension_numbers<[1], [0], [0], [1], [0, 0, 1, 1], [], []>} : vector<16x36xbf16>, vector<36x36xbf16>, vector<16x36xf32> -> vector<16x36xf32>
    %87 = vector.extract_strided_slice %86 {offsets = [0, 0], sizes = [16, 4], strides = [1, 1]} : vector<16x36xf32> to vector<16x4xf32>
    %88 = vector.extract_strided_slice %86 {offsets = [0, 4], sizes = [16, 4], strides = [1, 1]} : vector<16x36xf32> to vector<16x4xf32>
    %89 = vector.extract_strided_slice %86 {offsets = [0, 8], sizes = [16, 4], strides = [1, 1]} : vector<16x36xf32> to vector<16x4xf32>
    %90 = vector.extract_strided_slice %86 {offsets = [0, 12], sizes = [16, 4], strides = [1, 1]} : vector<16x36xf32> to vector<16x4xf32>
    %91 = vector.extract_strided_slice %86 {offsets = [0, 16], sizes = [16, 4], strides = [1, 1]} : vector<16x36xf32> to vector<16x4xf32>
    %92 = vector.extract_strided_slice %86 {offsets = [0, 20], sizes = [16, 4], strides = [1, 1]} : vector<16x36xf32> to vector<16x4xf32>
    %93 = vector.extract_strided_slice %86 {offsets = [0, 24], sizes = [16, 4], strides = [1, 1]} : vector<16x36xf32> to vector<16x4xf32>
    %94 = vector.extract_strided_slice %86 {offsets = [0, 28], sizes = [16, 4], strides = [1, 1]} : vector<16x36xf32> to vector<16x4xf32>
    %95 = vector.extract_strided_slice %86 {offsets = [0, 32], sizes = [16, 4], strides = [1, 1]} : vector<16x36xf32> to vector<16x4xf32>
    %96 = tpu.concatenate %87, %88, %89, %90, %91, %92, %93, %94, %95 in 0 : vector<16x4xf32>, vector<16x4xf32>, vector<16x4xf32>, vector<16x4xf32>, vector<16x4xf32>, vector<16x4xf32>, vector<16x4xf32>, vector<16x4xf32>, vector<16x4xf32> -> vector<144x4xf32>
    %97 = vector.extract_strided_slice %82 {offsets = [0, 36], sizes = [16, 36], strides = [1, 1]} : vector<16x72xf32> to vector<16x36xf32>
    %98 = arith.truncf %97 : vector<16x36xf32> to vector<16x36xbf16>
    %c0_35 = arith.constant 0 : index
    %c0_36 = arith.constant 0 : index
    %99 = vector.load %arg8[%c0_35, %c0_36] : memref<36x36xbf16, #tpu.memory_space<vmem>>, vector<36x36xbf16>
    %cst_37 = arith.constant dense<0.000000e+00> : vector<16x36xf32>
    %100 = tpu.matmul %98, %99, %cst_37 {dimension_numbers = #tpu.dot_dimension_numbers<[1], [0], [0], [1], [0, 0, 1, 1], [], []>} : vector<16x36xbf16>, vector<36x36xbf16>, vector<16x36xf32> -> vector<16x36xf32>
    %101 = vector.extract_strided_slice %100 {offsets = [0, 0], sizes = [16, 4], strides = [1, 1]} : vector<16x36xf32> to vector<16x4xf32>
    %102 = vector.extract_strided_slice %100 {offsets = [0, 4], sizes = [16, 4], strides = [1, 1]} : vector<16x36xf32> to vector<16x4xf32>
    %103 = vector.extract_strided_slice %100 {offsets = [0, 8], sizes = [16, 4], strides = [1, 1]} : vector<16x36xf32> to vector<16x4xf32>
    %104 = vector.extract_strided_slice %100 {offsets = [0, 12], sizes = [16, 4], strides = [1, 1]} : vector<16x36xf32> to vector<16x4xf32>
    %105 = vector.extract_strided_slice %100 {offsets = [0, 16], sizes = [16, 4], strides = [1, 1]} : vector<16x36xf32> to vector<16x4xf32>
    %106 = vector.extract_strided_slice %100 {offsets = [0, 20], sizes = [16, 4], strides = [1, 1]} : vector<16x36xf32> to vector<16x4xf32>
    %107 = vector.extract_strided_slice %100 {offsets = [0, 24], sizes = [16, 4], strides = [1, 1]} : vector<16x36xf32> to vector<16x4xf32>
    %108 = vector.extract_strided_slice %100 {offsets = [0, 28], sizes = [16, 4], strides = [1, 1]} : vector<16x36xf32> to vector<16x4xf32>
    %109 = vector.extract_strided_slice %100 {offsets = [0, 32], sizes = [16, 4], strides = [1, 1]} : vector<16x36xf32> to vector<16x4xf32>
    %110 = tpu.concatenate %101, %102, %103, %104, %105, %106, %107, %108, %109 in 0 : vector<16x4xf32>, vector<16x4xf32>, vector<16x4xf32>, vector<16x4xf32>, vector<16x4xf32>, vector<16x4xf32>, vector<16x4xf32>, vector<16x4xf32>, vector<16x4xf32> -> vector<144x4xf32>
    %111 = tpu.concatenate %96, %110 in 1 : vector<144x4xf32>, vector<144x4xf32> -> vector<144x8xf32>
    %c0_38 = arith.constant 0 : index
    %c0_39 = arith.constant 0 : index
    %112 = vector.load %arg9[%c0_38, %c0_39] : memref<32x144xbf16, #tpu.memory_space<vmem>>, vector<32x144xbf16>
    %113 = arith.truncf %111 : vector<144x8xf32> to vector<144x8xbf16>
    %cst_40 = arith.constant dense<0.000000e+00> : vector<32x8xf32>
    %114 = tpu.matmul %112, %113, %cst_40 {dimension_numbers = #tpu.dot_dimension_numbers<[1], [0], [0], [1], [0, 0, 1, 1], [], []>} : vector<32x144xbf16>, vector<144x8xbf16>, vector<32x8xf32> -> vector<32x8xf32>
    %cst_41 = arith.constant dense<0.000000e+00> : vector<32xf32>
    %115 = vector.multi_reduction <add>, %114, %cst_41 [1] : vector<32x8xf32> to vector<32xf32>
    %116 = vector.shape_cast %115 : vector<32xf32> to vector<32x1xf32>
    %cst_42 = arith.constant 1.250000e-01 : f32
    %117 = vector.broadcast %cst_42 : f32 to vector<32x1xf32>
    %118 = arith.mulf %116, %117 : vector<32x1xf32>
    %119 = vector.broadcast %118 : vector<32x1xf32> to vector<32x8xf32>
    %120 = arith.subf %114, %119 : vector<32x8xf32>
    %121 = arith.mulf %120, %120 : vector<32x8xf32>
    %cst_43 = arith.constant dense<0.000000e+00> : vector<32xf32>
    %122 = vector.multi_reduction <add>, %121, %cst_43 [1] : vector<32x8xf32> to vector<32xf32>
    %123 = vector.shape_cast %122 : vector<32xf32> to vector<32x1xf32>
    %cst_44 = arith.constant 1.250000e-01 : f32
    %124 = vector.broadcast %cst_44 : f32 to vector<32x1xf32>
    %125 = arith.mulf %123, %124 : vector<32x1xf32>
    %cst_45 = arith.constant 9.99999974E-6 : f32
    %126 = vector.broadcast %cst_45 : f32 to vector<32x1xf32>
    %127 = arith.addf %125, %126 : vector<32x1xf32>
    %128 = math.rsqrt %127 : vector<32x1xf32>
    %129 = vector.broadcast %128 : vector<32x1xf32> to vector<32x8xf32>
    %130 = arith.mulf %120, %129 : vector<32x8xf32>
    %c0_46 = arith.constant 0 : index
    %c0_47 = arith.constant 0 : index
    %131 = vector.load %arg10[%c0_46, %c0_47] : memref<32x1xf32, #tpu.memory_space<vmem>>, vector<32x1xf32>
    %132 = vector.broadcast %131 : vector<32x1xf32> to vector<32x8xf32>
    %133 = arith.mulf %130, %132 : vector<32x8xf32>
    %c0_48 = arith.constant 0 : index
    %c0_49 = arith.constant 0 : index
    %134 = vector.load %arg11[%c0_48, %c0_49] : memref<32x1xf32, #tpu.memory_space<vmem>>, vector<32x1xf32>
    %135 = vector.broadcast %134 : vector<32x1xf32> to vector<32x8xf32>
    %136 = arith.addf %133, %135 : vector<32x8xf32>
    %cst_50 = arith.constant 0.000000e+00 : f32
    %137 = vector.broadcast %cst_50 : f32 to vector<32x8xf32>
    %138 = arith.maximumf %136, %137 : vector<32x8xf32>
    %139 = arith.truncf %138 : vector<32x8xf32> to vector<32x8xbf16>
    %c0_51 = arith.constant 0 : index
    %c0_52 = arith.constant 0 : index
    %140 = vector.load %arg12[%c0_51, %c0_52] : memref<8x8xbf16, #tpu.memory_space<vmem>>, vector<8x8xbf16>
    %141 = vector.extract_strided_slice %140 {offsets = [0, 0], sizes = [8, 2], strides = [1, 1]} : vector<8x8xbf16> to vector<8x2xbf16>
    %cst_53 = arith.constant dense<0.000000e+00> : vector<32x2xf32>
    %142 = tpu.matmul %139, %141, %cst_53 {dimension_numbers = #tpu.dot_dimension_numbers<[1], [0], [0], [1], [0, 0, 1, 1], [], []>} : vector<32x8xbf16>, vector<8x2xbf16>, vector<32x2xf32> -> vector<32x2xf32>
    %143 = vector.extract_strided_slice %140 {offsets = [0, 2], sizes = [8, 2], strides = [1, 1]} : vector<8x8xbf16> to vector<8x2xbf16>
    %cst_54 = arith.constant dense<0.000000e+00> : vector<32x2xf32>
    %144 = tpu.matmul %139, %143, %cst_54 {dimension_numbers = #tpu.dot_dimension_numbers<[1], [0], [0], [1], [0, 0, 1, 1], [], []>} : vector<32x8xbf16>, vector<8x2xbf16>, vector<32x2xf32> -> vector<32x2xf32>
    %145 = vector.extract_strided_slice %140 {offsets = [0, 4], sizes = [8, 2], strides = [1, 1]} : vector<8x8xbf16> to vector<8x2xbf16>
    %cst_55 = arith.constant dense<0.000000e+00> : vector<32x2xf32>
    %146 = tpu.matmul %139, %145, %cst_55 {dimension_numbers = #tpu.dot_dimension_numbers<[1], [0], [0], [1], [0, 0, 1, 1], [], []>} : vector<32x8xbf16>, vector<8x2xbf16>, vector<32x2xf32> -> vector<32x2xf32>
    %147 = vector.extract_strided_slice %140 {offsets = [0, 6], sizes = [8, 2], strides = [1, 1]} : vector<8x8xbf16> to vector<8x2xbf16>
    %cst_56 = arith.constant dense<0.000000e+00> : vector<32x2xf32>
    %148 = tpu.matmul %139, %147, %cst_56 {dimension_numbers = #tpu.dot_dimension_numbers<[1], [0], [0], [1], [0, 0, 1, 1], [], []>} : vector<32x8xbf16>, vector<8x2xbf16>, vector<32x2xf32> -> vector<32x2xf32>
    %149 = tpu.concatenate %142, %144, %146, %148 in 0 : vector<32x2xf32>, vector<32x2xf32>, vector<32x2xf32>, vector<32x2xf32> -> vector<128x2xf32>
    %150 = arith.truncf %149 : vector<128x2xf32> to vector<128x2xbf16>
    %c0_57 = arith.constant 0 : index
    %c0_58 = arith.constant 0 : index
    %151 = vector.load %arg13[%c0_57, %c0_58] : memref<32x128xbf16, #tpu.memory_space<vmem>>, vector<32x128xbf16>
    %cst_59 = arith.constant dense<0.000000e+00> : vector<32x2xf32>
    %152 = tpu.matmul %151, %150, %cst_59 {dimension_numbers = #tpu.dot_dimension_numbers<[1], [0], [0], [1], [0, 0, 1, 1], [], []>} : vector<32x128xbf16>, vector<128x2xbf16>, vector<32x2xf32> -> vector<32x2xf32>
    %c0_60 = arith.constant 0 : index
    %c0_61 = arith.constant 0 : index
    %153 = vector.load %arg14[%c0_60, %c0_61] : memref<32x1xf32, #tpu.memory_space<vmem>>, vector<32x1xf32>
    %154 = vector.broadcast %153 : vector<32x1xf32> to vector<32x2xf32>
    %155 = arith.addf %152, %154 : vector<32x2xf32>
    %c0_62 = arith.constant 0 : index
    %c0_63 = arith.constant 0 : index
    %156 = vector.load %arg15[%c0_62, %c0_63] : memref<32x2xf32, #tpu.memory_space<vmem>>, vector<32x2xf32>
    tpu.vector_store %arg15[%c0_62, %c0_63], %155 {strides = array<i32>} : memref<32x2xf32, #tpu.memory_space<vmem>>, vector<32x2xf32>,
    return
  }
}

</mosaic_0001>

<bundles_post_ra>
// kernel: encoder_forward.1
= control target key start
LH: loop header
LB: loop body
LE: loop exit
PB: predicated region body
PF: predicated region fallthrough
CT: control target
= control target key end

     0   :  { %vm73_vm0 = vcmask 1043456   ;;  %vm74_vm1 = vcmask 1044480   ;;  %v2092_v0 = vmov 0.0   ;;  %v2093_v2 = vmov 65535   ;;  %s2097_s20 = smov 92   ;;  %s2098_s21 = smov 4   ;;  %s2734_s0 = inlined_call_operand.vmem [shape: bf16[9,338], index: 0, kind: input, shape index: {}]   ;;  %s2735_s1 = inlined_call_operand.vmem [shape: bf16[8,9], index: 1, kind: input, shape index: {}]   ;;  %s2736_s2 = inlined_call_operand.vmem [shape: f32[8,1], index: 2, kind: input, shape index: {}]   ;;  %s2737_s3 = inlined_call_operand.vmem [shape: f32[8,1], index: 3, kind: input, shape index: {}]   ;;  %s2738_s4 = inlined_call_operand.vmem [shape: bf16[169,324], index: 4, kind: input, shape index: {}]   ;;  %s2739_s5 = inlined_call_operand.vmem [shape: bf16[16,72], index: 5, kind: input, shape index: {}]   ;;  %s2740_s6 = inlined_call_operand.vmem [shape: f32[16,1], index: 6, kind: input, shape index: {}]   ;;  %s2741_s7 = inlined_call_operand.vmem [shape: f32[16,1], index: 7, kind: input, shape index: {}]   ;;  %s2742_s8 = inlined_call_operand.vmem [shape: bf16[36,36], index: 8, kind: input, shape index: {}]   ;;  %s2743_s9 = inlined_call_operand.vmem [shape: bf16[32,144], index: 9, kind: input, shape index: {}]   ;;  %s2744_s10 = inlined_call_operand.vmem [shape: f32[32,1], index: 10, kind: input, shape index: {}]   ;;  %s2745_s11 = inlined_call_operand.vmem [shape: f32[32,1], index: 11, kind: input, shape index: {}]   ;;  %s2746_s12 = inlined_call_operand.vmem [shape: bf16[8,8], index: 12, kind: input, shape index: {}]   ;;  %s2747_s14 = inlined_call_operand.vmem [shape: f32[32,1], index: 14, kind: input, shape index: {}]   ;;  %s2748_s13 = inlined_call_operand.vmem [shape: bf16[32,128], index: 13, kind: input, shape index: {}]   ;;  %s2749_s15 = inlined_call_operand.vmem [shape: f32[32,2], index: 15, kind: output, shape index: {}]  }
   0x1   :  { %1740 = vmatprep.subr.bf16.mxu1 %v2092_v0  ;;  %v2017_v1 = vld [vmem:[%s2734_s0 + $0x4] ss:$12 sps:$4 sm:$0x1f]   ;;  %v75_v3 = vsel %vm73_vm0, 4294967295, %v2093_v2  ;;  %vm2094_vm2 = vmmov 0   ;;  %v2095_v8 = vmov 0  }
   0x2   :  { %v2199_v4 = vsel %vm74_vm1, %v75_v3, 0  ;;  %v2019_v5 = vld [vmem:[%s2734_s0 + $0x8] ss:$12 sps:$4 sm:$0x1f]   ;;  %1742 = vmatprep.mubr.msk.bf16.mxu1 %vm2094_vm2, %v2092_v0  ;;  %118 = vmatprep.mubr.bf16.mxu0 %v2095_v8  ;;  %v51_v11 = vld [vmem:[%s2735_s1] sm:$0xf] }
   0x3   :  { %v81_v6 = vand.u32 %v2017_v1, %v2199_v4  ;;  %v2020_v7 = vld [vmem:[%s2734_s0] ss:$12 sps:$4 sm:$0x1f]   ;;  %1850 = vset.pattern.permute.xlu1 %v2095_v8  ;;  %v84_v9 = vand.u32 %v2019_v5, %v2199_v4  ;;  %1891 = vset.pattern.permute.xlu0 %v2095_v8  ;;  %vm69_vm3 = vcmask 72704   ;;  %vm168_vm4 = vcmask 670720   ;;  %s2099_s22 = smov 56  }
   0x4   :  { %v78_v10 = vand.u32 %v2020_v7, %v2199_v4  ;;  %v191_v23 = vld [vmem:[%s2736_s2] sm:$0xff]  ;;  %v2239_v27 = vld [vmem:[%s2738_s4 + $0x8] ss:$12 sps:$4 sm:$0xff]   ;;  %v2271_v32 = vld [vmem:[%s2738_s4 + $0x30] ss:$12 sps:$4 sm:$0xff]   ;;  %vm431_vm5 = vcmask 334848  }
   0x5   :  { %86 = vmatprep.subr.bf16.mxu0 %v81_v6  ;;  %1741 = vmatpush3.bf16.msra.mxu1 %v84_v9  ;;  %v200_v24 = vld [vmem:[%s2737_s3] sm:$0xff]  ;;  %v2252_v29 = vld [vmem:[%s2738_s4 + $0x1c] ss:$12 sps:$4 sm:$0xff]   ;;  %v2283_v34 = vld [vmem:[%s2738_s4 + $0x4c] ss:$12 sps:$4 sm:$0xff]   ;;  %vm567_vm6 = vcmask 711680  }
   0x6   :  { %87 = vmatpush1.bf16.msra.mxu0 %v78_v10  ;;  %485 = vmatprep.subr.bf16.mxu1 %v2095_v8  ;;  %v2229_v25 = vld [vmem:[%s2738_s4] ss:$12 sps:$4 sm:$0xff]   ;;  %v2234_v26 = vld [vmem:[%s2738_s4 + $0x4] ss:$12 sps:$4 sm:$0xff]   ;;  %v2288_v35 = vld [vmem:[%s2738_s4 + $0x48] ss:$12 sps:$4 sm:$0xff]  }
   0x7   :  { %194 = vperm.xlu1 %1850, %v191_v23   ;;  %444 = vmatprep.subr.bf16.mxu0 %v2234_v26  ;;  %v2245_v28 = vld [vmem:[%s2738_s4 + $0x18] ss:$12 sps:$4 sm:$0xff]   ;;  %v2258_v30 = vld [vmem:[%s2738_s4 + $0x20] ss:$12 sps:$4 sm:$0xff]   ;;  %v2293_v36 = vld [vmem:[%s2738_s4 + $0x50] ss:$12 sps:$4 sm:$0xff]  }
   0x8   :  { %1743 = vmatmul.mubr.msk.bf16.vlgmr.msra.gmra.mrb[0].mxu1 %vm69_vm3, %v51_v11  ;;  %v2264_v31 = vld [vmem:[%s2738_s4 + $0x34] ss:$12 sps:$4 sm:$0xff]   ;;  %v2276_v33 = vld [vmem:[%s2738_s4 + $0x38] ss:$12 sps:$4 sm:$0xff]   ;;  %v2325_v51 = vld [vmem:[%s2738_s4 + $0x7c] ss:$12 sps:$4 sm:$0xff]  }
   0x9   :  { %1639 = vmatmul.mubr.msk.bf16.vlgmr.msra.gmra.mrb[0].mxu0 %vm69_vm3, %v51_v11  ;;  %486 = vmatpush1.bf16.msra.mxu1 %v2239_v27  ;;  %v2300_v37 = vld [vmem:[%s2738_s4 + $0x64] ss:$12 sps:$4 sm:$0xff]   ;;  %v2307_v38 = vld [vmem:[%s2738_s4 + $0x60] ss:$12 sps:$4 sm:$0xff]   ;;  %v2312_v39 = vld [vmem:[%s2738_s4 + $0x68] ss:$12 sps:$4 sm:$0xff]  }
   0xa   :  { %445 = vmatpush1.bf16.msra.mxu0 %v2229_v25  ;;  %487 = vmatprep.subr.bf16.mxu1 %v2095_v8  ;;  %v2330_v52 = vld [vmem:[%s2738_s4 + $0x78] ss:$12 sps:$4 sm:$0xff]   ;;  %v2335_v53 = vld [vmem:[%s2738_s4 + $0x80] ss:$12 sps:$4 sm:$0xff]   ;;  %v2343_v54 = vld [vmem:[%s2738_s4 + $0x90] ss:$12 sps:$4 sm:$0xff]  }
   0xb   :  { %203 = vperm.xlu1 %1850, %v200_v24   ;;  %446 = vmatprep.subr.bf16.mxu0 %v2252_v29  ;;  %v2348_v55 = vld [vmem:[%s2738_s4 + $0x94] ss:$12 sps:$4 sm:$0xff]   ;;  %v2354_v56 = vld [vmem:[%s2738_s4 + $0x98] ss:$12 sps:$4 sm:$0xff]   ;;  %v2373_v59 = vld [vmem:[%s2738_s4 + $0xb0] ss:$12 sps:$4 sm:$0xff]  }
   0xc   :  { %v2362_v57 = vld [vmem:[%s2738_s4 + $0xac] ss:$12 sps:$4 sm:$0xff]   ;;  %v2368_v58 = vld [vmem:[%s2738_s4 + $0xa8] ss:$12 sps:$4 sm:$0xff]   ;;  %v2381_v60 = vld [vmem:[%s2738_s4 + $0xc4] ss:$12 sps:$4 sm:$0xff]  }
   0xd   :  { %488 = vmatpush1.bf16.msra.mxu1 %v2258_v30  ;;  %v2387_v61 = vld [vmem:[%s2738_s4 + $0xc0] ss:$12 sps:$4 sm:$0xff]   ;;  %v2392_v62 = vld [vmem:[%s2738_s4 + $0xc8] ss:$12 sps:$4 sm:$0xff]   ;;  %v2406_v1 = vld [vmem:[%s2738_s4 + $0xd8] ss:$12 sps:$4 sm:$0xff]  }
   0xe   :  { %447 = vmatpush1.bf16.msra.mxu0 %v2245_v28  ;;  %489 = vmatprep.subr.bf16.mxu1 %v2095_v8  ;;  %v2400_v63 = vld [vmem:[%s2738_s4 + $0xdc] ss:$12 sps:$4 sm:$0xff]   ;;  %v2411_v2 = vld [vmem:[%s2738_s4 + $0xe0] ss:$12 sps:$4 sm:$0xff]   ;;  %s2100_s23 = smov 96   ;;  %s2101_s24 = smov 20  }
   0xf   :  { %448 = vmatprep.subr.bf16.mxu0 %v2264_v31  ;;  %v2063_v3 = vld [vmem:[%s2738_s4 + $0xf4] ss:$12 sps:$4 sm:$0x1f]   ;;  %v2061_v5 = vld [vmem:[%s2738_s4 + $0xf0] ss:$12 sps:$4 sm:$0x1f]  }
  0x10   :  { %v2064_v6 = vld [vmem:[%s2738_s4 + $0xf8] ss:$12 sps:$4 sm:$0x1f]   ;;  %v2426_v7 = vand.u32 %v2063_v3, %v2199_v4  ;;  %v2430_v9 = vand.u32 %v2061_v5, %v2199_v4  ;;  %s2096_s4 = smov 87   ;;  %s2102_s25 = smov 112   ;;  %vm537_vm7 = vcmask 162816  }
  0x11   :  { %490 = vmatpush1.bf16.msra.mxu1 %v2276_v33  ;;  %v2433_v10 = vand.u32 %v2064_v6, %v2199_v4  ;;  %s2103_s0 = smov 76   ;;  %s2104_s1 = smov 40   ;;  %vm554_vm8 = vcmask 31744   ;;  %vm706_vm9 = vcmask 293888   ;;  %vm728_vm10 = vcmask 588800  }
  0x12   :  { %449 = vmatpush1.bf16.msra.mxu0 %v2271_v32  ;;  %491 = vmatprep.subr.bf16.mxu1 %v2095_v8  ;;  %s2105_s26 = smov 36   ;;  %vm856_vm11 = vcmask 1041408   ;;  %s2111_s27 = smov 104   ;;  %vm1135_vm12 = vcmask 130048   ;;  %vm1191_vm13 = vcmask 64512   ;;  %vm1627_vm14 = vcmask 15360  }
  0x13   :  { %450 = vmatprep.subr.bf16.mxu0 %v2283_v34 }
  0x15   :  { %492 = vmatpush1.bf16.msra.mxu1 %v2293_v36 }
  0x16   :  { %451 = vmatpush1.bf16.msra.mxu0 %v2288_v35  ;;  %493 = vmatprep.subr.bf16.mxu1 %v2095_v8 }
  0x17   :  { %452 = vmatprep.subr.bf16.mxu0 %v2300_v37 }
  0x19   :  { %494 = vmatpush1.bf16.msra.mxu1 %v2312_v39 }
  0x1a   :  { %453 = vmatpush1.bf16.msra.mxu0 %v2307_v38  ;;  %495 = vmatprep.subr.bf16.mxu1 %v2095_v8 }
  0x1b   :  { %454 = vmatprep.subr.bf16.mxu0 %v2325_v51 }
  0x1d   :  { %496 = vmatpush1.bf16.msra.mxu1 %v2335_v53 }
  0x1e   :  { %455 = vmatpush1.bf16.msra.mxu0 %v2330_v52  ;;  %497 = vmatprep.subr.bf16.mxu1 %v2095_v8 }
  0x1f   :  { %456 = vmatprep.subr.bf16.mxu0 %v2348_v55 }
  0x21   :  { %498 = vmatpush1.bf16.msra.mxu1 %v2354_v56 }
  0x22   :  { %457 = vmatpush1.bf16.msra.mxu0 %v2343_v54  ;;  %499 = vmatprep.subr.bf16.mxu1 %v2095_v8 }
  0x23   :  { %458 = vmatprep.subr.bf16.mxu0 %v2362_v57 }
  0x25   :  { %500 = vmatpush1.bf16.msra.mxu1 %v2373_v59 }
  0x26   :  { %459 = vmatpush1.bf16.msra.mxu0 %v2368_v58  ;;  %501 = vmatprep.subr.bf16.mxu1 %v2095_v8 }
  0x27   :  { %460 = vmatprep.subr.bf16.mxu0 %v2381_v60 }
  0x29   :  { %502 = vmatpush1.bf16.msra.mxu1 %v2392_v62 }
  0x2a   :  { %461 = vmatpush1.bf16.msra.mxu0 %v2387_v61  ;;  %503 = vmatprep.subr.bf16.mxu1 %v2095_v8 }
  0x2b   :  { %462 = vmatprep.subr.bf16.mxu0 %v2400_v63 }
  0x2d   :  { %504 = vmatpush1.bf16.msra.mxu1 %v2411_v2 }
  0x2e   :  { %463 = vmatpush1.bf16.msra.mxu0 %v2406_v1  ;;  %505 = vmatprep.subr.bf16.mxu1 %v2095_v8 }
  0x2f   :  { %464 = vmatprep.subr.bf16.mxu0 %v2426_v7 }
  0x31   :  { %506 = vmatpush1.bf16.msra.mxu1 %v2433_v10 }
  0x32   :  { %465 = vmatpush1.bf16.msra.mxu0 %v2430_v9  ;;  %614 = vmatprep.subr.bf16.mxu1 %v2095_v8 }
  0x33   :  { %573 = vmatprep.subr.bf16.mxu0 %v2234_v26 }
  0xdb   :  { %v161_v12 = vpop.f32.mrb[0].mxu1 }
  0xdc   :  { %v120_v13 = vpop.f32.mrb[0].mxu0  ;;  %v1744_v14 = vpop.f32.mrb[1].mxu1  ;;  %v169_v17 = vsel %vm168_vm4, %v161_v12, 0.0 }
  0xdd   :  { %v122_v15 = vpop.f32.mrb[1].mxu0  ;;  %v164_v16 = vpop.f32.mrb[2].mxu1 }
  0xde   :  { %v167_v18 = vadd.f32 %v122_v15, %v120_v13  ;;  %v124_v19 = vpop.f32.mrb[2].mxu0  ;;  %v1745_v20 = vpop.f32.mrb[3].mxu1 }
  0xdf   :  { %v125_v21 = vpop.f32.mrb[3].mxu0  ;;  %v195_v14 = vpop.permute.xlu1 %194 }
  0xe0   :  { %v170_v22 = vadd.f32 %v169_v17, %v167_v18 }
  0xe2   :  { %171 = vadd.xlane.f32.xlu0 %v170_v22 }
  0xe3   :  { %v204_v21 = vpop.permute.xlu1 %203 }
 0x16f   :  { %v172_v40 = vpop.xlane.xlu0 %171 }
 0x170   :  { %v173_v41 = vmul.f32 0.00295858, %v172_v40 }
 0x172   :  { %v174_v42 = vsub.f32 %v120_v13, %v173_v41  ;;  %v175_v43 = vsub.f32 %v122_v15, %v173_v41  ;;  %v176_v44 = vsub.f32 %v161_v12, %v173_v41 }
 0x174   :  { %v177_v45 = vmul.f32 %v174_v42, %v174_v42  ;;  %v178_v46 = vmul.f32 %v175_v43, %v175_v43  ;;  %v179_v47 = vmul.f32 %v176_v44, %v176_v44 }
 0x176   :  { %v180_v48 = vadd.f32 %v178_v46, %v177_v45  ;;  %v181_v49 = vsel %vm168_vm4, %v179_v47, 0.0 }
 0x178   :  { %v182_v50 = vadd.f32 %v181_v49, %v180_v48 }
 0x17a   :  { %183 = vadd.xlane.f32.xlu0 %v182_v50 }
 0x207   :  { %v184_v11 = vpop.xlane.xlu0 %183 }
 0x208   :  { %v185_v12 = vmul.f32 0.00295858, %v184_v11 }
 0x20a   :  { %v186_v13 = vadd.f32 1e-05, %v185_v12 }
 0x20c   :  { %2078 = vrsqrt.f32 %v186_v13 }
 0x216   :  { %v2079_v15 = vpop.eup %2078 }
 0x217   :  { %v188_v16 = vmul.f32 %v2079_v15, %v174_v42  ;;  %v189_v17 = vmul.f32 %v2079_v15, %v175_v43  ;;  %v190_v4 = vmul.f32 %v2079_v15, %v176_v44 }
 0x219   :  { %v197_v18 = vmul.f32 %v195_v14, %v188_v16  ;;  %v198_v19 = vmul.f32 %v195_v14, %v189_v17  ;;  %v199_v20 = vmul.f32 %v195_v14, %v190_v4 }
 0x21b   :  { %v206_v22 = vadd.f32 %v204_v21, %v197_v18  ;;  %v207_v23 = vadd.f32 %v204_v21, %v198_v19  ;;  %v208_v24 = vadd.f32 %v204_v21, %v199_v20 }
 0x21d   :  { %v209_v40 = vmax.f32 %v206_v22, 0.0  ;;  %v210_v26 = vmax.f32 %v207_v23, 0.0  ;;  %v211_v41 = vmax.f32 %v208_v24, 0.0 }
 0x21f   :  { %v212_v45 = vpack.c.bf16 %v209_v40, %v209_v40  ;;  %v560_v46 = vpack.c.bf16 %v211_v41, %v211_v41  ;;  %v213_v47 = vpack.c.bf16 %v210_v26, %v210_v26 }
 0x221   :  { %565 = vrot.lane.b32.xlu1 %v560_v46, %s2096_s4  ;;  %563 = vrot.lane.b32.xlu0 %v213_v47, %s2096_s4 }
 0x222   :  { %1674 = vmatprep.mubr.msk.bf16.mxu0 %vm431_vm5, %v213_v47  ;;  %1675 = vmatprep.mubr.msk.bf16.mxu1 %vm431_vm5, %v213_v47 }
 0x223   :  { %477 = vmatmul.mubr.bf16.vlgmr.msra.gmra.mrb[4].mxu0 %v212_v45  ;;  %518 = vmatmul.mubr.bf16.vlgmr.msra.gmra.mrb[4].mxu1 %v212_v45 }
 0x224   :  { %574 = vmatpush1.bf16.msra.mxu0 %v2229_v25  ;;  %615 = vmatpush1.bf16.msra.mxu1 %v2239_v27 }
 0x225   :  { %575 = vmatprep.subr.bf16.mxu0 %v2252_v29  ;;  %616 = vmatprep.subr.bf16.mxu1 %v2095_v8 }
 0x228   :  { %576 = vmatpush1.bf16.msra.mxu0 %v2245_v28  ;;  %617 = vmatpush1.bf16.msra.mxu1 %v2258_v30 }
 0x229   :  { %577 = vmatprep.subr.bf16.mxu0 %v2264_v31  ;;  %618 = vmatprep.subr.bf16.mxu1 %v2095_v8 }
 0x22c   :  { %578 = vmatpush1.bf16.msra.mxu0 %v2271_v32  ;;  %619 = vmatpush1.bf16.msra.mxu1 %v2276_v33 }
 0x22d   :  { %579 = vmatprep.subr.bf16.mxu0 %v2283_v34  ;;  %620 = vmatprep.subr.bf16.mxu1 %v2095_v8 }
 0x230   :  { %580 = vmatpush1.bf16.msra.mxu0 %v2288_v35  ;;  %621 = vmatpush1.bf16.msra.mxu1 %v2293_v36 }
 0x231   :  { %581 = vmatprep.subr.bf16.mxu0 %v2300_v37  ;;  %622 = vmatprep.subr.bf16.mxu1 %v2095_v8 }
 0x234   :  { %582 = vmatpush1.bf16.msra.mxu0 %v2307_v38  ;;  %623 = vmatpush1.bf16.msra.mxu1 %v2312_v39 }
 0x235   :  { %583 = vmatprep.subr.bf16.mxu0 %v2325_v51  ;;  %624 = vmatprep.subr.bf16.mxu1 %v2095_v8 }
 0x238   :  { %584 = vmatpush1.bf16.msra.mxu0 %v2330_v52  ;;  %625 = vmatpush1.bf16.msra.mxu1 %v2335_v53 }
 0x239   :  { %585 = vmatprep.subr.bf16.mxu0 %v2348_v55  ;;  %626 = vmatprep.subr.bf16.mxu1 %v2095_v8 }
 0x23c   :  { %586 = vmatpush1.bf16.msra.mxu0 %v2343_v54  ;;  %627 = vmatpush1.bf16.msra.mxu1 %v2354_v56 }
 0x23d   :  { %587 = vmatprep.subr.bf16.mxu0 %v2362_v57  ;;  %628 = vmatprep.subr.bf16.mxu1 %v2095_v8 }
 0x240   :  { %588 = vmatpush1.bf16.msra.mxu0 %v2368_v58  ;;  %629 = vmatpush1.bf16.msra.mxu1 %v2373_v59 }
 0x241   :  { %589 = vmatprep.subr.bf16.mxu0 %v2381_v60  ;;  %630 = vmatprep.subr.bf16.mxu1 %v2095_v8 }
 0x244   :  { %590 = vmatpush1.bf16.msra.mxu0 %v2387_v61  ;;  %631 = vmatpush1.bf16.msra.mxu1 %v2392_v62 }
 0x245   :  { %591 = vmatprep.subr.bf16.mxu0 %v2400_v63  ;;  %632 = vmatprep.subr.bf16.mxu1 %v2095_v8 }
 0x248   :  { %592 = vmatpush1.bf16.msra.mxu0 %v2406_v1  ;;  %633 = vmatpush1.bf16.msra.mxu1 %v2411_v2 }
 0x249   :  { %593 = vmatprep.subr.bf16.mxu0 %v2426_v7  ;;  %634 = vmatprep.subr.bf16.mxu1 %v2095_v8 }
 0x24c   :  { %594 = vmatpush1.bf16.msra.mxu0 %v2430_v9  ;;  %635 = vmatpush1.bf16.msra.mxu1 %v2433_v10 }
 0x24d   :  { %1746 = vmatprep.subr.bf16.mxu1 %v2092_v0  ;;  %1142 = vmatprep.subr.bf16.mxu0 %v2095_v8 }
 0x293   :  { %v566_v25 = vpop.permute.xlu1 %565  ;;  %v564_v27 = vpop.permute.xlu0 %563 }
 0x294   :  { %v568_v28 = vsel %vm567_vm6, %v564_v27, %v566_v25  ;;  %1676 = vmatprep.mubr.msk.bf16.mxu0 %vm431_vm5, %v566_v25  ;;  %1677 = vmatprep.mubr.msk.bf16.mxu1 %vm431_vm5, %v566_v25 }
 0x295   :  { %606 = vmatmul.mubr.bf16.vlgmr.msra.gmra.mrb[8].mxu0 %v568_v28  ;;  %647 = vmatmul.mubr.bf16.vlgmr.msra.gmra.mrb[8].mxu1 %v568_v28 }
 0x296   :  { %1756 = vmatprep.mubr.msk.bf16.mxu1 %vm2094_vm2, %v2092_v0 }
 0x2f6   :  { %v2490_v29 = vpop.f32.mrb[4].mxu0  ;;  %v2492_v30 = vpop.f32.mrb[4].mxu1 }
 0x2f7   :  { %v2494_v31 = vpop.f32.mrb[5].mxu0  ;;  %v521_v32 = vpop.f32.mrb[5].mxu1 }
 0x2f8   :  { %v482_v33 = vpop.f32.mrb[6].mxu0  ;;  %v522_v34 = vpop.f32.mrb[6].mxu1  ;;  %v1861_v35 = vpack.i.bf16 %v2494_v31, %v2490_v29  ;;  %v1881_v36 = vpack.i.bf16 %v2492_v30, %v2494_v31 }
 0x2f9   :  { %v483_v37 = vpop.f32.mrb[7].mxu0  ;;  %v523_v38 = vpop.f32.mrb[7].mxu1 }
 0x368   :  { %v607_v39 = vpop.f32.mrb[8].mxu0  ;;  %v648_v42 = vpop.f32.mrb[8].mxu1 }
 0x369   :  { %v650_v43 = vpop.f32.mrb[9].mxu1  ;;  %655 = vrot.lane.b32.xlu1 %v607_v39, %s2097_s20  ;;  %v609_v44 = vpop.f32.mrb[9].mxu0 }
 0x36a   :  { %v611_v48 = vpop.f32.mrb[10].mxu0  ;;  %v651_v49 = vpop.f32.mrb[10].mxu1  ;;  %v1856_v50 = vpack.i.bf16 %v648_v42, %v609_v44  ;;  %v1851_v51 = vpack.i.bf16 %v609_v44, %v607_v39 }
 0x36b   :  { %v612_v52 = vpop.f32.mrb[11].mxu0  ;;  %v652_v53 = vpop.f32.mrb[11].mxu1 }
 0x36c   :  { %1857 = vrot.lane.b32.xlu0 %v1856_v50, %s2098_s21  ;;  %v2065_v52 = vld [vmem:[%s2739_s5] sm:$0xff]  }
 0x36d   :  { %657 = vrot.lane.b32.xlu1 %v607_v39, %s2099_s22 }
 0x370   :  { %677 = vrot.lane.b32.xlu0 %v648_v42, %s2100_s23 }
 0x371   :  { %1852 = vrot.lane.b32.xlu1 %v1851_v51, %s2101_s24 }
 0x374   :  { %529 = vrot.lane.b32.xlu0 %v2490_v29, %s2099_s22 }
 0x375   :  { %665 = vrot.lane.b32.xlu1 %v609_v44, %s2102_s25 }
 0x379   :  { %667 = vrot.lane.b32.xlu1 %v609_v44, %s2103_s0 }
 0x37d   :  { %669 = vrot.lane.b32.xlu1 %v609_v44, %s2104_s1 }
 0x381   :  { %526 = vrot.lane.b32.xlu1 %v2490_v29, %s2097_s20 }
 0x385   :  { %1862 = vrot.lane.b32.xlu1 %v1861_v35, %s2101_s24 }
 0x389   :  { %543 = vrot.lane.b32.xlu1 %v2494_v31, %s2103_s0 }
 0x3db   :  { %v656_v54 = vpop.permute.xlu1 %655 }
 0x3dc   :  { %v1866_v55 = vpack.i.bf16 %v656_v54, %v607_v39 }
 0x3de   :  { %1867 = vrot.lane.b32.xlu0 %v1866_v55, %s2105_s26  ;;  %v1858_v63 = vpop.permute.xlu0 %1857 }
 0x3df   :  { %v658_v56 = vpop.permute.xlu1 %657  ;;  %v1860_v1 = vunpack.i.h.bf16 %v1858_v63  ;;  %v1859_v2 = vunpack.i.l.bf16 %v1858_v63 }
 0x3e1   :  { %v676_v6 = vsel %vm554_vm8, %v1859_v2, %v1860_v1 }
 0x3e2   :  { %540 = vrot.lane.b32.xlu0 %v2494_v31, %s2102_s25  ;;  %v678_v10 = vpop.permute.xlu0 %677 }
 0x3e3   :  { %v1853_v57 = vpop.permute.xlu1 %1852 }
 0x3e4   :  { %v1855_v58 = vunpack.i.h.bf16 %v1853_v57  ;;  %v1854_v59 = vunpack.i.l.bf16 %v1853_v57 }
 0x3e6   :  { %v664_v60 = vsel %vm537_vm7, %v1854_v59, %v1855_v58  ;;  %v530_v12 = vpop.permute.xlu0 %529  ;;  %v802_v59 = vld [vmem:[%s2740_s6] sm:$0xff] }
 0x3e7   :  { %v666_v61 = vpop.permute.xlu1 %665  ;;  %v1876_v62 = vpack.i.bf16 %v664_v60, %v658_v56  ;;  %v816_v60 = vld [vmem:[%s2741_s7] sm:$0xff] }
 0x3e9   :  { %1877 = vrot.lane.b32.xlu1 %v1876_v62, %s2105_s26 }
 0x3eb   :  { %v668_v3 = vpop.permute.xlu1 %667 }
 0x3ec   :  { %v1871_v5 = vpack.i.bf16 %v668_v3, %v666_v61  ;;  %v817_v61 = vld [vmem:[%s2741_s7 + $0x8] sm:$0xff] }
 0x3ed   :  { %1882 = vrot.lane.b32.xlu1 %v1881_v36, %s2098_s21 }
 0x3ee   :  { %1872 = vrot.lane.b32.xlu0 %v1871_v5, %s2105_s26 }
 0x3ef   :  { %v670_v7 = vpop.permute.xlu1 %669 }
 0x3f0   :  { %v1886_v9 = vpack.i.bf16 %v676_v6, %v670_v7 }
 0x3f2   :  { %546 = vrot.lane.b32.xlu0 %v2494_v31, %s2104_s1  ;;  %1887 = vrot.lane.b32.xlu1 %v1886_v9, %s2105_s26  ;;  %s2109_s1 = smov 120  }
 0x3f3   :  { %v527_v11 = vpop.permute.xlu1 %526 }
 0x3f6   :  { %557 = vrot.lane.b32.xlu0 %v2492_v30, %s2100_s23  ;;  %695 = vrot.lane.b32.xlu1 %v678_v10, %s2105_s26  ;;  %s2110_s26 = smov 116  }
 0x3f7   :  { %v1863_v14 = vpop.permute.xlu1 %1862 }
 0x3f8   :  { %v1865_v20 = vunpack.i.h.bf16 %v1863_v14  ;;  %v1864_v21 = vunpack.i.l.bf16 %v1863_v14  ;;  %v2068_v14 = vld [vmem:[%s2742_s8 + $0x10] ss:$0 sps:$4 sm:$0x33]  }
 0x3fa   :  { %v538_v26 = vsel %vm537_vm7, %v1864_v21, %v1865_v20 }
 0x3fb   :  { %v544_v19 = vpop.permute.xlu1 %543 }
 0x450   :  { %v1868_v13 = vpop.permute.xlu0 %1867 }
 0x451   :  { %v1870_v15 = vunpack.i.h.bf16 %v1868_v13  ;;  %v1869_v16 = vunpack.i.l.bf16 %v1868_v13  ;;  %v2067_v13 = vld [vmem:[%s2742_s8 + $0x8] sm:$0xff]  }
 0x453   :  { %v707_v17 = vsel %vm706_vm9, %v2490_v29, %v1869_v16  ;;  %v708_v4 = vsel %vm706_vm9, %v527_v11, %v1870_v15  ;;  %v803_v11 = vld [vmem:[%s2740_s6 + $0x8] sm:$0xff]  ;;  %v858_v15 = vsel %vm856_vm11, %v2068_v14, 0  ;;  %s2106_s6 = smov 108  }
 0x454   :  { %v718_v18 = vpack.c.bf16 %v708_v4, %v707_v17  ;;  %v541_v23 = vpop.permute.xlu0 %540 }
 0x456   :  { %1747 = vmatpush3.bf16.msra.mxu1 %v718_v18 }
 0x457   :  { %1748 = vmatprep.subr.bf16.mxu1 %v2092_v0 }
 0x45b   :  { %v1878_v22 = vpop.permute.xlu1 %1877 }
 0x45c   :  { %v1880_v24 = vunpack.i.h.bf16 %v1878_v22  ;;  %v1879_v40 = vunpack.i.l.bf16 %v1878_v22 }
 0x45e   :  { %v710_v41 = vsel %vm706_vm9, %v538_v26, %v1880_v24  ;;  %v709_v45 = vsel %vm706_vm9, %v530_v12, %v1879_v40  ;;  %v2066_v12 = vld [vmem:[%s2742_s8] sm:$0xff]   ;;  %s2107_s8 = smov 124  }
 0x45f   :  { %v719_v46 = vpack.c.bf16 %v710_v41, %v709_v45  ;;  %v1883_v47 = vpop.permute.xlu1 %1882 }
 0x460   :  { %v1873_v25 = vpop.permute.xlu0 %1872  ;;  %v1885_v29 = vunpack.i.h.bf16 %v1883_v47  ;;  %v1884_v30 = vunpack.i.l.bf16 %v1883_v47 }
 0x461   :  { %v1875_v27 = vunpack.i.h.bf16 %v1873_v25  ;;  %v1874_v28 = vunpack.i.l.bf16 %v1873_v25  ;;  %1749 = vmatpush3.bf16.msra.mxu1 %v719_v46 }
 0x462   :  { %1750 = vmatprep.subr.bf16.mxu1 %v2092_v0  ;;  %v555_v38 = vsel %vm554_vm8, %v1884_v30, %v1885_v29 }
 0x463   :  { %v711_v31 = vsel %vm706_vm9, %v541_v23, %v1874_v28  ;;  %v712_v32 = vsel %vm706_vm9, %v544_v19, %v1875_v27 }
 0x464   :  { %v720_v33 = vpack.c.bf16 %v712_v32, %v711_v31  ;;  %v547_v34 = vpop.permute.xlu0 %546  ;;  %v1888_v35 = vpop.permute.xlu1 %1887 }
 0x465   :  { %v1890_v36 = vunpack.i.h.bf16 %v1888_v35  ;;  %v1889_v37 = vunpack.i.l.bf16 %v1888_v35 }
 0x466   :  { %1751 = vmatpush3.bf16.msra.mxu1 %v720_v33 }
 0x467   :  { %v713_v39 = vsel %vm706_vm9, %v547_v34, %v1889_v37  ;;  %v714_v42 = vsel %vm706_vm9, %v555_v38, %v1890_v36  ;;  %1752 = vmatprep.subr.bf16.mxu1 %v2092_v0 }
 0x468   :  { %v721_v43 = vpack.c.bf16 %v714_v42, %v713_v39  ;;  %v558_v44 = vpop.permute.xlu0 %557  ;;  %v696_v48 = vpop.permute.xlu1 %695 }
 0x469   :  { %v715_v49 = vsel %vm706_vm9, %v558_v44, %v696_v48 }
 0x46a   :  { %v722_v50 = vpack.c.bf16 %v715_v49, %v715_v49  ;;  %1753 = vmatpush3.bf16.msra.mxu1 %v721_v43 }
 0x46b   :  { %1754 = vmatprep.subr.bf16.mxu1 %v2092_v0 }
 0x46c   :  { %v733_v51 = vsel %vm73_vm0, %v722_v50, 0 }
 0x46e   :  { %1755 = vmatpush3.bf16.msra.mxu1 %v733_v51 }
 0x46f   :  { %1760 = vmatprep.subr.bf16.mxu1 %v2092_v0 }
 0x471   :  { %1757 = vmatmul.mubr.msk.bf16.vlgmr.msra.gmra.mrb[12].mxu1 %vm728_vm10, %v2065_v52 }
 0x472   :  { %1766 = vmatprep.mubr.msk.bf16.mxu1 %vm2094_vm2, %v2092_v0  ;;  %1761 = vmatpush3.bf16.msra.mxu1 %v2066_v12 }
 0x473   :  { %1762 = vmatprep.subr.bf16.mxu1 %v2092_v0 }
 0x476   :  { %1763 = vmatpush3.bf16.msra.mxu1 %v2067_v13 }
 0x477   :  { %1764 = vmatprep.subr.bf16.mxu1 %v2092_v0 }
 0x47a   :  { %1765 = vmatpush3.bf16.msra.mxu1 %v858_v15 }
 0x47b   :  { %1770 = vmatprep.subr.bf16.mxu1 %v2092_v0 }
 0x544   :  { %v769_v53 = vpop.f32.mrb[12].mxu1 }
 0x545   :  { %v1758_v54 = vpop.f32.mrb[13].mxu1  ;;  %v776_v55 = vsel %vm728_vm10, %v769_v53, 0.0 }
 0x546   :  { %777 = vadd.xlane.f32.xlu0 %v776_v55  ;;  %v772_v56 = vpop.f32.mrb[14].mxu1 }
 0x547   :  { %v1759_v57 = vpop.f32.mrb[15].mxu1  ;;  %v779_v58 = vsel %vm728_vm10, %v772_v56, 0.0 }
 0x548   :  { %780 = vadd.xlane.f32.xlu1 %v779_v58 }
 0x559   :  { %806 = vperm.xlu1 %1850, %v802_v59  }
 0x55d   :  { %820 = vperm.xlu1 %1850, %v816_v60   ;;  %v2069_v60 = vld [vmem:[%s2743_s9 + $0x4] ss:$8 sps:$4 sm:$0xff]  }
 0x55e   :  { %1689 = vmatprep.mubr.msk.bf16.mxu0 %vm1135_vm12, %v2069_v60 }
 0x561   :  { %825 = vperm.xlu1 %1850, %v817_v61  }
 0x5d3   :  { %v778_v62 = vpop.xlane.xlu0 %777 }
 0x5d4   :  { %v782_v63 = vmul.f32 0.013888889, %v778_v62 }
 0x5d5   :  { %v781_v1 = vpop.xlane.xlu1 %780 }
 0x5d6   :  { %v784_v2 = vsub.f32 %v769_v53, %v782_v63  ;;  %v783_v3 = vmul.f32 0.013888889, %v781_v1 }
 0x5d8   :  { %v785_v5 = vsub.f32 %v772_v56, %v783_v3  ;;  %v786_v6 = vmul.f32 %v784_v2, %v784_v2 }
 0x5d9   :  { %v807_v21 = vpop.permute.xlu1 %806 }
 0x5da   :  { %v788_v7 = vsel %vm728_vm10, %v786_v6, 0.0  ;;  %v787_v9 = vmul.f32 %v785_v5, %v785_v5 }
 0x5db   :  { %789 = vadd.xlane.f32.xlu0 %v788_v7 }
 0x5dc   :  { %v791_v10 = vsel %vm728_vm10, %v787_v9, 0.0 }
 0x5dd   :  { %v821_v24 = vpop.permute.xlu1 %820 }
 0x5df   :  { %792 = vadd.xlane.f32.xlu0 %v791_v10 }
 0x5e1   :  { %v826_v25 = vpop.permute.xlu1 %825 }
 0x5f5   :  { %811 = vperm.xlu0 %1891, %v803_v11  }
 0x668   :  { %v790_v16 = vpop.xlane.xlu0 %789 }
 0x669   :  { %v794_v17 = vmul.f32 0.013888889, %v790_v16 }
 0x66b   :  { %v796_v4 = vadd.f32 1e-05, %v794_v17 }
 0x66c   :  { %v793_v18 = vpop.xlane.xlu0 %792 }
 0x66d   :  { %2080 = vrsqrt.f32 %v796_v4  ;;  %v795_v19 = vmul.f32 0.013888889, %v793_v18 }
 0x66f   :  { %v797_v20 = vadd.f32 1e-05, %v795_v19 }
 0x671   :  { %2082 = vrsqrt.f32 %v797_v20 }
 0x674   :  { %v812_v41 = vpop.permute.xlu0 %811 }
 0x677   :  { %v2081_v22 = vpop.eup %2080 }
 0x678   :  { %v800_v23 = vmul.f32 %v2081_v22, %v784_v2 }
 0x67a   :  { %v814_v40 = vmul.f32 %v807_v21, %v800_v23 }
 0x67b   :  { %v2083_v26 = vpop.eup %2082 }
 0x67c   :  { %v801_v45 = vmul.f32 %v2083_v26, %v785_v5  ;;  %v828_v47 = vadd.f32 %v821_v24, %v814_v40 }
 0x67e   :  { %v815_v46 = vmul.f32 %v812_v41, %v801_v45  ;;  %v830_v29 = vmax.f32 %v828_v47, 0.0 }
 0x680   :  { %v829_v27 = vadd.f32 %v826_v25, %v815_v46 }
 0x682   :  { %v831_v28 = vmax.f32 %v829_v27, 0.0 }
 0x684   :  { %v832_v30 = vpack.c.bf16 %v831_v28, %v830_v29 }
 0x686   :  { %952 = vrot.lane.b32.xlu1 %v832_v30, %s2097_s20  ;;  %1767 = vmatmul.mubr.msk.bf16.vlgmr.msra.gmra.mrb[16].mxu1 %vm706_vm9, %v832_v30  ;;  %s2108_s20 = smov 100  }
 0x687   :  { %1771 = vmatpush3.bf16.msra.mxu1 %v2066_v12  ;;  %1776 = vmatprep.mubr.msk.bf16.mxu1 %vm2094_vm2, %v2092_v0 }
 0x688   :  { %1772 = vmatprep.subr.bf16.mxu1 %v2092_v0 }
 0x68b   :  { %1773 = vmatpush3.bf16.msra.mxu1 %v2067_v13 }
 0x68c   :  { %1774 = vmatprep.subr.bf16.mxu1 %v2092_v0 }
 0x68f   :  { %1775 = vmatpush3.bf16.msra.mxu1 %v858_v15 }
 0x6f8   :  { %v953_v31 = vpop.permute.xlu1 %952 }
 0x6f9   :  { %1777 = vmatmul.mubr.msk.bf16.vlgmr.msra.gmra.mrb[20].mxu1 %vm706_vm9, %v953_v31 }
 0x759   :  { %v894_v32 = vpop.f32.mrb[16].mxu1 }
 0x75a   :  { %v1768_v33 = vpop.f32.mrb[17].mxu1 }
 0x75b   :  { %v897_v34 = vpop.f32.mrb[18].mxu1 }
 0x75c   :  { %v1769_v35 = vpop.f32.mrb[19].mxu1  ;;  %v1932_v36 = vpack.i.bf16 %v897_v34, %v894_v32 }
 0x7cc   :  { %v991_v37 = vpop.f32.mrb[20].mxu1 }
 0x7cd   :  { %v1778_v38 = vpop.f32.mrb[21].mxu1 }
 0x7ce   :  { %v994_v39 = vpop.f32.mrb[22].mxu1 }
 0x7cf   :  { %v1779_v42 = vpop.f32.mrb[23].mxu1  ;;  %v1912_v43 = vpack.i.bf16 %v994_v39, %v991_v37 }
 0x7d1   :  { %1913 = vrot.lane.b32.xlu0 %v1912_v43, %s2106_s6  ;;  %1893 = vrot.lane.b32.xlu1 %v1912_v43, %s2107_s8 }
 0x7d5   :  { %1923 = vrot.lane.b32.xlu0 %v1912_v43, %s2108_s20  ;;  %1898 = vrot.lane.b32.xlu1 %v1912_v43, %s2109_s1 }
 0x7d9   :  { %1973 = vrot.lane.b32.xlu0 %v1912_v43, %s2098_s21  ;;  %1903 = vrot.lane.b32.xlu1 %v1912_v43, %s2110_s26 }
 0x7dd   :  { %1908 = vrot.lane.b32.xlu1 %v1912_v43, %s2102_s25 }
 0x7e1   :  { %1918 = vrot.lane.b32.xlu1 %v1912_v43, %s2111_s27 }
 0x7e5   :  { %1928 = vrot.lane.b32.xlu1 %v1912_v43, %s2100_s23 }
 0x7e9   :  { %1933 = vrot.lane.b32.xlu1 %v1932_v36, %s2107_s8 }
 0x7ed   :  { %1938 = vrot.lane.b32.xlu1 %v1932_v36, %s2109_s1 }
 0x7f1   :  { %1943 = vrot.lane.b32.xlu1 %v1932_v36, %s2110_s26 }
 0x7f5   :  { %1948 = vrot.lane.b32.xlu1 %v1932_v36, %s2102_s25  ;;  %s2113_s25 = smov 122  }
 0x7f9   :  { %1953 = vrot.lane.b32.xlu1 %v1932_v36, %s2106_s6 }
 0x7fd   :  { %1958 = vrot.lane.b32.xlu1 %v1932_v36, %s2111_s27 }
 0x801   :  { %1963 = vrot.lane.b32.xlu1 %v1932_v36, %s2108_s20 }
 0x805   :  { %1968 = vrot.lane.b32.xlu1 %v1932_v36, %s2100_s23  ;;  %s2112_s23 = smov 126  }
 0x843   :  { %v1914_v0 = vpop.permute.xlu0 %1913  ;;  %v1894_v44 = vpop.permute.xlu1 %1893 }
 0x844   :  { %1978 = vrot.lane.b32.xlu0 %v1894_v44, %s2098_s21 }
 0x847   :  { %v1924_v48 = vpop.permute.xlu0 %1923  ;;  %v1899_v49 = vpop.permute.xlu1 %1898 }
 0x848   :  { %1983 = vrot.lane.b32.xlu0 %v1899_v49, %s2098_s21 }
 0x84b   :  { %v1974_v50 = vpop.permute.xlu0 %1973  ;;  %v1904_v51 = vpop.permute.xlu1 %1903 }
 0x84c   :  { %v1976_v52 = vunpack.i.h.bf16 %v1974_v50  ;;  %v1975_v53 = vunpack.i.l.bf16 %v1974_v50  ;;  %1988 = vrot.lane.b32.xlu0 %v1904_v51, %s2098_s21 }
 0x84e   :  { %v1087_v54 = vsel %vm554_vm8, %v897_v34, %v1976_v52  ;;  %v1086_v55 = vsel %vm554_vm8, %v894_v32, %v1975_v53 }
 0x84f   :  { %v1108_v56 = vpack.c.bf16 %v1087_v54, %v1086_v55  ;;  %v1909_v57 = vpop.permute.xlu1 %1908 }
 0x850   :  { %1993 = vrot.lane.b32.xlu0 %v1909_v57, %s2098_s21 }
 0x851   :  { %1143 = vmatpush1.bf16.msra.mxu0 %v1108_v56 }
 0x852   :  { %1144 = vmatprep.subr.bf16.mxu0 %v2095_v8 }
 0x853   :  { %v1919_v58 = vpop.permute.xlu1 %1918 }
 0x854   :  { %1998 = vrot.lane.b32.xlu0 %v1914_v0, %s2098_s21 }
 0x857   :  { %v1929_v59 = vpop.permute.xlu1 %1928 }
 0x858   :  { %2003 = vrot.lane.b32.xlu0 %v1919_v58, %s2098_s21 }
 0x85b   :  { %v1934_v61 = vpop.permute.xlu1 %1933 }
 0x85c   :  { %2008 = vrot.lane.b32.xlu0 %v1924_v48, %s2098_s21  ;;  %v1936_v2 = vunpack.i.h.bf16 %v1934_v61  ;;  %v1935_v3 = vunpack.i.l.bf16 %v1934_v61 }
 0x85f   :  { %v1939_v62 = vpop.permute.xlu1 %1938 }
 0x860   :  { %2013 = vrot.lane.b32.xlu0 %v1929_v59, %s2098_s21  ;;  %v1941_v13 = vunpack.i.h.bf16 %v1939_v62  ;;  %v1940_v14 = vunpack.i.l.bf16 %v1939_v62 }
 0x863   :  { %v1944_v63 = vpop.permute.xlu1 %1943 }
 0x864   :  { %v1946_v21 = vunpack.i.h.bf16 %v1944_v63  ;;  %v1945_v22 = vunpack.i.l.bf16 %v1944_v63 }
 0x867   :  { %v1949_v7 = vpop.permute.xlu1 %1948 }
 0x868   :  { %v1951_v46 = vunpack.i.h.bf16 %v1949_v7  ;;  %v1950_v47 = vunpack.i.l.bf16 %v1949_v7 }
 0x86b   :  { %v1954_v18 = vpop.permute.xlu1 %1953 }
 0x86c   :  { %v1956_v33 = vunpack.i.h.bf16 %v1954_v18  ;;  %v1955_v34 = vunpack.i.l.bf16 %v1954_v18 }
 0x86f   :  { %v1959_v28 = vpop.permute.xlu1 %1958 }
 0x870   :  { %v1961_v0 = vunpack.i.h.bf16 %v1959_v28  ;;  %v1960_v44 = vunpack.i.l.bf16 %v1959_v28 }
 0x873   :  { %v1964_v39 = vpop.permute.xlu1 %1963 }
 0x874   :  { %v1966_v54 = vunpack.i.h.bf16 %v1964_v39  ;;  %v1965_v55 = vunpack.i.l.bf16 %v1964_v39 }
 0x877   :  { %v1969_v58 = vpop.permute.xlu1 %1968 }
 0x878   :  { %v1971_v63 = vunpack.i.h.bf16 %v1969_v58 }
 0x8b6   :  { %v1979_v1 = vpop.permute.xlu0 %1978 }
 0x8b7   :  { %v1981_v5 = vunpack.i.h.bf16 %v1979_v1  ;;  %v1980_v6 = vunpack.i.l.bf16 %v1979_v1  ;;  %v1970_v1 = vunpack.i.l.bf16 %v1969_v58 }
 0x8b9   :  { %v1089_v9 = vsel %vm554_vm8, %v1936_v2, %v1981_v5  ;;  %v1088_v10 = vsel %vm554_vm8, %v1935_v3, %v1980_v6 }
 0x8ba   :  { %v1109_v11 = vpack.c.bf16 %v1089_v9, %v1088_v10  ;;  %v1984_v12 = vpop.permute.xlu0 %1983  ;;  %v2071_v9 = vld [vmem:[%s2743_s9] ss:$8 sps:$4 sm:$0xff]   ;;  %v2072_v10 = vld [vmem:[%s2743_s9 + $0x14] ss:$8 sps:$4 sm:$0xff]  }
 0x8bb   :  { %v1986_v15 = vunpack.i.h.bf16 %v1984_v12  ;;  %v1985_v16 = vunpack.i.l.bf16 %v1984_v12 }
 0x8bc   :  { %1145 = vmatpush1.bf16.msra.mxu0 %v1109_v11  ;;  %v2074_v11 = vld [vmem:[%s2743_s9 + $0x10] ss:$8 sps:$4 sm:$0xff]  }
 0x8bd   :  { %v1091_v17 = vsel %vm554_vm8, %v1941_v13, %v1986_v15  ;;  %v1090_v4 = vsel %vm554_vm8, %v1940_v14, %v1985_v16  ;;  %1146 = vmatprep.subr.bf16.mxu0 %v2095_v8 }
 0x8be   :  { %v1110_v19 = vpack.c.bf16 %v1091_v17, %v1090_v4  ;;  %v1989_v20 = vpop.permute.xlu0 %1988 }
 0x8bf   :  { %v1991_v23 = vunpack.i.h.bf16 %v1989_v20  ;;  %v1990_v24 = vunpack.i.l.bf16 %v1989_v20 }
 0x8c0   :  { %1147 = vmatpush1.bf16.msra.mxu0 %v1110_v19 }
 0x8c1   :  { %v1093_v40 = vsel %vm554_vm8, %v1946_v21, %v1991_v23  ;;  %v1092_v26 = vsel %vm554_vm8, %v1945_v22, %v1990_v24  ;;  %1148 = vmatprep.subr.bf16.mxu0 %v2095_v8  ;;  %v1245_v22 = vld [vmem:[%s2744_s10 + $0x8] sm:$0xff]  ;;  %v1244_v23 = vld [vmem:[%s2744_s10] sm:$0xff]  ;;  %v1246_v24 = vld [vmem:[%s2744_s10 + $0x10] sm:$0xff] }
 0x8c2   :  { %v1111_v41 = vpack.c.bf16 %v1093_v40, %v1092_v26  ;;  %v1994_v45 = vpop.permute.xlu0 %1993  ;;  %v1247_v40 = vld [vmem:[%s2744_s10 + $0x18] sm:$0xff]  ;;  %v1272_v26 = vld [vmem:[%s2745_s11] sm:$0xff] }
 0x8c3   :  { %v1996_v25 = vunpack.i.h.bf16 %v1994_v45  ;;  %v1995_v27 = vunpack.i.l.bf16 %v1994_v45  ;;  %v1306_v45 = vld [vmem:[%s2746_s12] sm:$0xf] }
 0x8c4   :  { %1149 = vmatpush1.bf16.msra.mxu0 %v1111_v41  ;;  %v1273_v41 = vld [vmem:[%s2745_s11 + $0x8] sm:$0xff]  ;;  %1824 = vmatprep.subr.msk.bf16.mxu1 %vm73_vm0, %v1306_v45 }
 0x8c5   :  { %v1095_v29 = vsel %vm554_vm8, %v1951_v46, %v1996_v25  ;;  %v1094_v30 = vsel %vm554_vm8, %v1950_v47, %v1995_v27  ;;  %1150 = vmatprep.subr.bf16.mxu0 %v2095_v8 }
 0x8c6   :  { %v1112_v31 = vpack.c.bf16 %v1095_v29, %v1094_v30  ;;  %v1999_v32 = vpop.permute.xlu0 %1998 }
 0x8c7   :  { %v2001_v35 = vunpack.i.h.bf16 %v1999_v32  ;;  %v2000_v36 = vunpack.i.l.bf16 %v1999_v32 }
 0x8c8   :  { %1151 = vmatpush1.bf16.msra.mxu0 %v1112_v31 }
 0x8c9   :  { %v1097_v37 = vsel %vm554_vm8, %v1956_v33, %v2001_v35  ;;  %v1096_v38 = vsel %vm554_vm8, %v1955_v34, %v2000_v36  ;;  %1152 = vmatprep.subr.bf16.mxu0 %v2095_v8 }
 0x8ca   :  { %v1113_v42 = vpack.c.bf16 %v1097_v37, %v1096_v38  ;;  %v2004_v43 = vpop.permute.xlu0 %2003 }
 0x8cb   :  { %v2006_v48 = vunpack.i.h.bf16 %v2004_v43  ;;  %v2005_v49 = vunpack.i.l.bf16 %v2004_v43 }
 0x8cc   :  { %1153 = vmatpush1.bf16.msra.mxu0 %v1113_v42 }
 0x8cd   :  { %v1099_v50 = vsel %vm554_vm8, %v1961_v0, %v2006_v48  ;;  %v1098_v51 = vsel %vm554_vm8, %v1960_v44, %v2005_v49  ;;  %1154 = vmatprep.subr.bf16.mxu0 %v2095_v8  ;;  %v1274_v48 = vld [vmem:[%s2745_s11 + $0x10] sm:$0xff]  ;;  %v1275_v49 = vld [vmem:[%s2745_s11 + $0x18] sm:$0xff] }
 0x8ce   :  { %v1114_v52 = vpack.c.bf16 %v1099_v50, %v1098_v51  ;;  %v2009_v53 = vpop.permute.xlu0 %2008  ;;  %v1693_v50 = vcombine.low %v1306_v45, %v1306_v45  ;;  %v1542_v51 = vld [vmem:[%s2747_s14] sm:$0xff] }
 0x8cf   :  { %v2011_v56 = vunpack.i.h.bf16 %v2009_v53  ;;  %v2010_v57 = vunpack.i.l.bf16 %v2009_v53  ;;  %v1544_v53 = vld [vmem:[%s2747_s14 + $0x10] sm:$0xff] }
 0x8d0   :  { %1155 = vmatpush1.bf16.msra.mxu0 %v1114_v52  ;;  %v1543_v52 = vld [vmem:[%s2747_s14 + $0x8] sm:$0xff] }
 0x8d1   :  { %v1101_v59 = vsel %vm554_vm8, %v1966_v54, %v2011_v56  ;;  %v1100_v60 = vsel %vm554_vm8, %v1965_v55, %v2010_v57  ;;  %1156 = vmatprep.subr.bf16.mxu0 %v2095_v8  ;;  %v1545_v54 = vld [vmem:[%s2747_s14 + $0x18] sm:$0xff]  ;;  %v1314_v55 = vsel %vm73_vm0, %v1306_v45, 0 }
 0x8d2   :  { %v1115_v61 = vpack.c.bf16 %v1101_v59, %v1100_v60  ;;  %v2014_v62 = vpop.permute.xlu0 %2013  ;;  %1781 = vmatpush3.bf16.msra.mxu1 %v1314_v55 }
 0x8d3   :  { %v2016_v2 = vunpack.i.h.bf16 %v2014_v62  ;;  %v2015_v3 = vunpack.i.l.bf16 %v2014_v62 }
 0x8d4   :  { %1157 = vmatpush1.bf16.msra.mxu0 %v1115_v61 }
 0x8d5   :  { %v1103_v5 = vsel %vm554_vm8, %v1971_v63, %v2016_v2  ;;  %v1102_v6 = vsel %vm554_vm8, %v1970_v1, %v2015_v3  ;;  %1158 = vmatprep.subr.bf16.mxu0 %v2095_v8 }
 0x8d6   :  { %v1116_v7 = vpack.c.bf16 %v1103_v5, %v1102_v6 }
 0x8d8   :  { %1159 = vmatpush1.bf16.msra.mxu0 %v1116_v7 }
 0x8db   :  { %1175 = vmatmul.mubr.bf16.vlgmr.msra.gmra.mrb[12].mxu0 %v2071_v9 }
 0x8dc   :  { %1690 = vmatprep.mubr.msk.bf16.mxu0 %vm1135_vm12, %v2072_v10 }
 0x8e3   :  { %1183 = vmatmul.mubr.bf16.gmra.mrb[16].mxu0 %v2074_v11 }
 0x9ae   :  { %v1176_v8 = vpop.f32.mrb[12].mxu0 }
 0x9af   :  { %v1178_v12 = vpop.f32.mrb[13].mxu0  ;;  %v1192_v13 = vsel %vm1191_vm13, %v1176_v8, 0.0 }
 0x9b0   :  { %1193 = vadd.xlane.f32.xlu1 %v1192_v13  ;;  %v1179_v14 = vpop.f32.mrb[14].mxu0 }
 0x9b1   :  { %v1181_v15 = vpop.f32.mrb[15].mxu0  ;;  %v1195_v16 = vsel %vm1191_vm13, %v1179_v14, 0.0 }
 0x9b2   :  { %1196 = vadd.xlane.f32.xlu0 %v1195_v16 }
 0x9b6   :  { %v1184_v17 = vpop.f32.mrb[16].mxu0 }
 0x9b7   :  { %v1186_v4 = vpop.f32.mrb[17].mxu0  ;;  %v1198_v18 = vsel %vm1191_vm13, %v1184_v17, 0.0 }
 0x9b8   :  { %1199 = vadd.xlane.f32.xlu0 %v1198_v18  ;;  %v1187_v19 = vpop.f32.mrb[18].mxu0 }
 0x9b9   :  { %v1189_v20 = vpop.f32.mrb[19].mxu0  ;;  %v1201_v21 = vsel %vm1191_vm13, %v1187_v19, 0.0 }
 0x9ba   :  { %1202 = vadd.xlane.f32.xlu1 %v1201_v21 }
 0x9cb   :  { %1255 = vperm.xlu1 %1850, %v1245_v22  }
 0x9ce   :  { %1250 = vperm.xlu0 %1891, %v1244_v23  }
 0x9cf   :  { %1260 = vperm.xlu1 %1850, %v1246_v24  }
 0x9d2   :  { %1265 = vperm.xlu0 %1891, %v1247_v40  }
 0x9d3   :  { %1278 = vperm.xlu1 %1850, %v1272_v26  }
 0x9d6   :  { %1283 = vperm.xlu0 %1891, %v1273_v41  }
 0xa3d   :  { %v1194_v46 = vpop.xlane.xlu1 %1193 }
 0xa3e   :  { %v1204_v47 = vmul.f32 0.125, %v1194_v46 }
 0xa3f   :  { %v1197_v25 = vpop.xlane.xlu0 %1196 }
 0xa40   :  { %v2658_v27 = vsub.f32 %v1176_v8, %v1204_v47  ;;  %v1205_v28 = vmul.f32 0.125, %v1197_v25 }
 0xa42   :  { %v2660_v29 = vsub.f32 %v1179_v14, %v1205_v28  ;;  %v1212_v30 = vmul.f32 %v2658_v27, %v2658_v27 }
 0xa44   :  { %v1216_v31 = vsel %vm1191_vm13, %v1212_v30, 0.0  ;;  %v1213_v32 = vmul.f32 %v2660_v29, %v2660_v29 }
 0xa45   :  { %1217 = vadd.xlane.f32.xlu0 %v1216_v31  ;;  %v1200_v33 = vpop.xlane.xlu0 %1199 }
 0xa46   :  { %v1206_v34 = vmul.f32 0.125, %v1200_v33  ;;  %v1219_v35 = vsel %vm1191_vm13, %v1213_v32, 0.0 }
 0xa47   :  { %1220 = vadd.xlane.f32.xlu1 %v1219_v35  ;;  %v1203_v36 = vpop.xlane.xlu1 %1202 }
 0xa48   :  { %v2668_v37 = vsub.f32 %v1184_v17, %v1206_v34  ;;  %v1207_v38 = vmul.f32 0.125, %v1203_v36  ;;  %v2076_v36 = vld [vmem:[%s2748_s13] sm:$0xff]  }
 0xa49   :  { %1820 = vmatprep.mubr.bf16.mxu0 %v2076_v36 }
 0xa4a   :  { %v2670_v39 = vsub.f32 %v1187_v19, %v1207_v38  ;;  %v1214_v42 = vmul.f32 %v2668_v37, %v2668_v37 }
 0xa4b   :  { %v1256_v57 = vpop.permute.xlu1 %1255 }
 0xa4c   :  { %v1222_v43 = vsel %vm1191_vm13, %v1214_v42, 0.0  ;;  %v1215_v0 = vmul.f32 %v2670_v39, %v2670_v39 }
 0xa4d   :  { %1223 = vadd.xlane.f32.xlu0 %v1222_v43  ;;  %v1251_v56 = vpop.permute.xlu0 %1250 }
 0xa4e   :  { %v1225_v44 = vsel %vm1191_vm13, %v1215_v0, 0.0 }
 0xa4f   :  { %1226 = vadd.xlane.f32.xlu1 %v1225_v44  ;;  %v1261_v59 = vpop.permute.xlu1 %1260 }
 0xa51   :  { %v1266_v58 = vpop.permute.xlu0 %1265 }
 0xa53   :  { %v1279_v61 = vpop.permute.xlu1 %1278 }
 0xa55   :  { %v1284_v60 = vpop.permute.xlu0 %1283 }
 0xa60   :  { %1288 = vperm.xlu1 %1850, %v1274_v48  }
 0xa63   :  { %1293 = vperm.xlu0 %1891, %v1275_v49  }
 0xa64   :  { %1368 = vrot.lane.b32.xlu1 %v1693_v50, %s2112_s23 }
 0xa67   :  { %1422 = vrot.lane.b32.xlu0 %v1693_v50, %s2107_s8 }
 0xa68   :  { %1476 = vrot.lane.b32.xlu1 %v1693_v50, %s2113_s25 }
 0xa6b   :  { %1548 = vperm.xlu0 %1891, %v1542_v51  }
 0xa6c   :  { %1553 = vperm.xlu1 %1850, %v1543_v52  }
 0xa6f   :  { %1558 = vperm.xlu0 %1891, %v1544_v53  }
 0xa70   :  { %1563 = vperm.xlu1 %1850, %v1545_v54  }
 0xad2   :  { %v1218_v62 = vpop.xlane.xlu0 %1217 }
 0xad3   :  { %v1228_v63 = vmul.f32 0.125, %v1218_v62 }
 0xad4   :  { %v1221_v1 = vpop.xlane.xlu1 %1220 }
 0xad5   :  { %v1232_v2 = vadd.f32 1e-05, %v1228_v63  ;;  %v1229_v3 = vmul.f32 0.125, %v1221_v1 }
 0xad7   :  { %2084 = vrsqrt.f32 %v1232_v2  ;;  %v1233_v5 = vadd.f32 1e-05, %v1229_v3  ;;  %v2077_v2 = vld [vmem:[%s2748_s13 + $0x8] sm:$0xff]  }
 0xad9   :  { %2086 = vrsqrt.f32 %v1233_v5 }
 0xada   :  { %v1224_v6 = vpop.xlane.xlu0 %1223 }
 0xadb   :  { %v1230_v7 = vmul.f32 0.125, %v1224_v6 }
 0xadc   :  { %v1227_v9 = vpop.xlane.xlu1 %1226 }
 0xadd   :  { %v1234_v10 = vadd.f32 1e-05, %v1230_v7  ;;  %v1231_v11 = vmul.f32 0.125, %v1227_v9 }
 0xadf   :  { %2088 = vrsqrt.f32 %v1234_v10  ;;  %v1235_v8 = vadd.f32 1e-05, %v1231_v11 }
 0xae0   :  { %v1289_v12 = vpop.permute.xlu1 %1288 }
 0xae1   :  { %v2085_v13 = vpop.eup %2084  ;;  %2090 = vrsqrt.f32 %v1235_v8 }
 0xae2   :  { %v1240_v14 = vmul.f32 %v2085_v13, %v2658_v27  ;;  %v1294_v25 = vpop.permute.xlu0 %1293 }
 0xae3   :  { %v2087_v15 = vpop.eup %2086 }
 0xae4   :  { %v1241_v16 = vmul.f32 %v2087_v15, %v2660_v29  ;;  %v1369_v17 = vpop.permute.xlu1 %1368  ;;  %v1268_v4 = vmul.f32 %v1251_v56, %v1240_v14 }
 0xae5   :  { %1825 = vmatprep.subr.msk.bf16.mxu1 %vm73_vm0, %v1369_v17  ;;  %v1371_v31 = vsel %vm73_vm0, %v1369_v17, 0 }
 0xae6   :  { %v1269_v18 = vmul.f32 %v1256_v57, %v1241_v16  ;;  %v1296_v19 = vadd.f32 %v1279_v61, %v1268_v4  ;;  %v1423_v32 = vpop.permute.xlu0 %1422 }
 0xae7   :  { %v1425_v33 = vsel %vm73_vm0, %v1423_v32, 0 }
 0xae8   :  { %v1297_v20 = vadd.f32 %v1284_v60, %v1269_v18  ;;  %v1300_v23 = vmax.f32 %v1296_v19, 0.0  ;;  %v1477_v34 = vpop.permute.xlu1 %1476 }
 0xae9   :  { %v2089_v21 = vpop.eup %2088  ;;  %v1479_v35 = vsel %vm73_vm0, %v1477_v34, 0 }
 0xaea   :  { %v1242_v22 = vmul.f32 %v2089_v21, %v2668_v37  ;;  %v1301_v24 = vmax.f32 %v1297_v20, 0.0  ;;  %v1549_v3 = vpop.permute.xlu0 %1548 }
 0xaeb   :  { %v2091_v40 = vpop.eup %2090 }
 0xaec   :  { %v1270_v26 = vmul.f32 %v1261_v59, %v1242_v22  ;;  %v1243_v41 = vmul.f32 %v2091_v40, %v2670_v39  ;;  %v1304_v45 = vpack.c.bf16 %v1301_v24, %v1300_v23  ;;  %v1554_v5 = vpop.permute.xlu1 %1553 }
 0xaee   :  { %v1298_v46 = vadd.f32 %v1289_v12, %v1270_v26  ;;  %v1271_v47 = vmul.f32 %v1266_v58, %v1243_v41  ;;  %1782 = vmatprep.mubr.msk.bf16.mxu1 %vm1191_vm13, %v1304_v45  ;;  %v1559_v6 = vpop.permute.xlu0 %1558 }
 0xaf0   :  { %v1299_v27 = vadd.f32 %v1294_v25, %v1271_v47  ;;  %v1302_v28 = vmax.f32 %v1298_v46, 0.0  ;;  %v1564_v11 = vpop.permute.xlu1 %1563 }
 0xaf2   :  { %v1303_v29 = vmax.f32 %v1299_v27, 0.0 }
 0xaf4   :  { %v1305_v30 = vpack.c.bf16 %v1303_v29, %v1302_v28 }
 0xaf6   :  { %1783 = vmatmul.mubr.msk.bf16.vlgmr.msra.gmra.mrb[24].mxu1 %vm1191_vm13, %v1305_v30 }
 0xaf7   :  { %1787 = vmatpush3.bf16.msra.mxu1 %v1371_v31  ;;  %1788 = vmatprep.mubr.msk.bf16.mxu1 %vm1191_vm13, %v1304_v45 }
 0xaf8   :  { %1826 = vmatprep.subr.msk.bf16.mxu1 %vm73_vm0, %v1423_v32 }
 0xafe   :  { %1789 = vmatmul.mubr.msk.bf16.vlgmr.msra.gmra.mrb[28].mxu1 %vm1191_vm13, %v1305_v30 }
 0xaff   :  { %1793 = vmatpush3.bf16.msra.mxu1 %v1425_v33  ;;  %1794 = vmatprep.mubr.msk.bf16.mxu1 %vm1191_vm13, %v1304_v45 }
 0xb00   :  { %1827 = vmatprep.subr.msk.bf16.mxu1 %vm73_vm0, %v1477_v34 }
 0xb06   :  { %1795 = vmatmul.mubr.msk.bf16.vlgmr.msra.gmra.mrb[32].mxu1 %vm1191_vm13, %v1305_v30 }
 0xb07   :  { %1799 = vmatpush3.bf16.msra.mxu1 %v1479_v35  ;;  %1800 = vmatprep.mubr.msk.bf16.mxu1 %vm1191_vm13, %v1304_v45 }
 0xb0e   :  { %1801 = vmatmul.mubr.msk.bf16.vlgmr.msra.gmra.mrb[36].mxu1 %vm1191_vm13, %v1305_v30 }
 0xbc9   :  { %v1784_v37 = vpop.f32.mrb[24].mxu1 }
 0xbca   :  { %v1350_v38 = vpop.f32.mrb[25].mxu1 }
 0xbcb   :  { %v1785_v39 = vpop.f32.mrb[26].mxu1 }
 0xbcc   :  { %v1531_v42 = vpack.c.bf16 %v1785_v39, %v1784_v37  ;;  %v1353_v43 = vpop.f32.mrb[27].mxu1 }
 0xbcd   :  { %v1530_v0 = vpack.c.bf16 %v1353_v43, %v1350_v38 }
 0xbcf   :  { %1804 = vmatprep.subr.bf16.mxu0 %v1530_v0 }
 0xbd0   :  { %1805 = vmatpush3.bf16.msra.mxu0 %v1530_v0 }
 0xbd1   :  { %v1790_v44 = vpop.f32.mrb[28].mxu1  ;;  %1806 = vmatprep.subr.bf16.mxu0 %v1531_v42 }
 0xbd2   :  { %v1407_v48 = vpop.f32.mrb[29].mxu1 }
 0xbd3   :  { %v1791_v49 = vpop.f32.mrb[30].mxu1 }
 0xbd4   :  { %v1533_v50 = vpack.c.bf16 %v1791_v49, %v1790_v44  ;;  %v1410_v51 = vpop.f32.mrb[31].mxu1  ;;  %1807 = vmatpush3.bf16.msra.mxu0 %v1531_v42 }
 0xbd5   :  { %v1532_v52 = vpack.c.bf16 %v1410_v51, %v1407_v48 }
 0xbd7   :  { %1808 = vmatprep.subr.bf16.mxu0 %v1532_v52 }
 0xbd8   :  { %1809 = vmatpush3.bf16.msra.mxu0 %v1532_v52 }
 0xbd9   :  { %v1796_v53 = vpop.f32.mrb[32].mxu1  ;;  %1810 = vmatprep.subr.bf16.mxu0 %v1533_v50 }
 0xbda   :  { %v1461_v54 = vpop.f32.mrb[33].mxu1 }
 0xbdb   :  { %v1797_v55 = vpop.f32.mrb[34].mxu1 }
 0xbdc   :  { %v1535_v56 = vpack.c.bf16 %v1797_v55, %v1796_v53  ;;  %v1464_v57 = vpop.f32.mrb[35].mxu1  ;;  %1811 = vmatpush3.bf16.msra.mxu0 %v1533_v50 }
 0xbdd   :  { %v1534_v58 = vpack.c.bf16 %v1464_v57, %v1461_v54 }
 0xbdf   :  { %1812 = vmatprep.subr.bf16.mxu0 %v1534_v58 }
 0xbe0   :  { %1813 = vmatpush3.bf16.msra.mxu0 %v1534_v58 }
 0xbe1   :  { %v1802_v59 = vpop.f32.mrb[36].mxu1  ;;  %1814 = vmatprep.subr.bf16.mxu0 %v1535_v56 }
 0xbe2   :  { %v1515_v60 = vpop.f32.mrb[37].mxu1 }
 0xbe3   :  { %v1803_v61 = vpop.f32.mrb[38].mxu1 }
 0xbe4   :  { %v1537_v62 = vpack.c.bf16 %v1803_v61, %v1802_v59  ;;  %v1518_v63 = vpop.f32.mrb[39].mxu1  ;;  %1815 = vmatpush3.bf16.msra.mxu0 %v1535_v56 }
 0xbe5   :  { %v1536_v1 = vpack.c.bf16 %v1518_v63, %v1515_v60 }
 0xbe7   :  { %1816 = vmatprep.subr.bf16.mxu0 %v1536_v1 }
 0xbe8   :  { %1817 = vmatpush3.bf16.msra.mxu0 %v1536_v1 }
 0xbe9   :  { %1818 = vmatprep.subr.bf16.mxu0 %v1537_v62 }
 0xbec   :  { %1819 = vmatpush3.bf16.msra.mxu0 %v1537_v62 }
 0xbef   :  { %1821 = vmatmul.mubr.bf16.vlgmr.msra.gmra.mrb[20].mxu0 %v2077_v2 }
 0xcc2   :  { %v1822_v7 = vpop.f32.mrb[20].mxu0 }
 0xcc3   :  { %v1621_v9 = vadd.f32 %v1822_v7, %v1559_v6  ;;  %v1612_v10 = vpop.f32.mrb[21].mxu0 }
 0xcc4   :  { %v1613_v8 = vadd.f32 %v1612_v10, %v1549_v3  ;;  %v1823_v12 = vpop.f32.mrb[22].mxu0 }
 0xcc5   :  { %1630 = vst.msk [vmem:[%s2749_s15 + $0x10] sm:$0xff] %vm1627_vm14, %v1621_v9  ;;  %v1624_v13 = vadd.f32 %v1823_v12, %v1564_v11  ;;  %v1615_v14 = vpop.f32.mrb[23].mxu0 }
 0xcc6   :  { %1628 = vst.msk [vmem:[%s2749_s15] sm:$0xff] %vm1627_vm14, %v1613_v8  ;;  %v1616_v15 = vadd.f32 %v1615_v14, %v1554_v5 }
 0xcc7   :  { %1631 = vst.msk [vmem:[%s2749_s15 + $0x18] sm:$0xff] %vm1627_vm14, %v1624_v13 }
 0xcc8   :  { %1629 = vst.msk [vmem:[%s2749_s15 + $0x8] sm:$0xff] %vm1627_vm14, %v1616_v15 }

</bundles_post_ra>
